<compile_context>
chip_gen: v7x
topology: tpu7x:2x2x1
jax: 0.10.0
libtpu: 0.0.40
codegen_flags: <defaults>
</compile_context>

<pallas_src>
import jax
import jax.numpy as jnp
from jax import lax
from jax.experimental import pallas as pl
from jax.experimental.pallas import tpu as pltpu

EPS = 1e-5


# ---------------------------------------------------------------------------
# Fused kernel: BN + Linear1 + ReLU + Linear2  |  relu(y) -> multi-layer LSTM
#               |  relu + split Linear3 + Softmax
# ---------------------------------------------------------------------------
def make_fused_kernel(num_layers, seq_len, batch):
    T, B = seq_len, batch
    f32 = jnp.float32

    def kernel(x_ref, y_ref, gamma_ref, beta_ref, w1_ref, b1_ref, w2_ref, b2_ref,
               w3a_ref, w3b_ref, b3_ref, *rest):
        out_ref = rest[-1]
        lstm_refs = rest[:-1]
        # layer 0: wih (D,4H), whh (H,4H), bias (1,4H); layers>=1: wcat (2H,4H), bias (1,4H)

        # ---- MLP branch: BatchNorm1d (batch statistics) -> Linear1 -> ReLU -> Linear2
        x = x_ref[...]                                           # (B, F)
        mean = jnp.mean(x, axis=0, keepdims=True)
        var = jnp.mean((x - mean) ** 2, axis=0, keepdims=True)   # biased var (PyTorch BN)
        xn = (x - mean) * lax.rsqrt(var + EPS)
        xn = xn * gamma_ref[...] + beta_ref[...]
        h1 = jnp.maximum(
            jnp.dot(xn, w1_ref[...], preferred_element_type=f32) + b1_ref[...], 0.0)
        x1 = jnp.dot(h1, w2_ref[...], preferred_element_type=f32) + b2_ref[...]  # (B, H2)

        # ---- LSTM branch; y_ref is time-major flattened (T*B, D); relu fused here ----
        wih0_ref, whh0_ref, b0_ref = lstm_refs[0:3]
        H = whh0_ref.shape[0]
        H3 = 3 * H

        y_act = jnp.maximum(y_ref[...], 0.0)                     # (T*B, D)

        # hoisted layer-0 input-to-hidden term: ONE packed matmul for all timesteps
        gx_all = (jnp.dot(y_act, wih0_ref[...], preferred_element_type=f32)
                  + b0_ref[...])                                 # (T*B, 4H)
        whh0 = whh0_ref[...]                                     # (H, 4H)

        def lstm_cell(pre, c):
            # gates packed along lanes in order [i | f | o | g]
            sig = jax.nn.sigmoid(pre[:, :H3])                    # one EUP pass: i, f, o
            g_g = jnp.tanh(pre[:, H3:])
            i_g = sig[:, :H]
            f_g = sig[:, H:2 * H]
            o_g = sig[:, 2 * H:]
            c = f_g * c + i_g * g_g
            h = o_g * jnp.tanh(c)
            return h, c

        # layer 0: fully unrolled recurrence; h/c stay in vregs (no scratch stores)
        h = jnp.zeros((B, H), f32)
        c = jnp.zeros((B, H), f32)
        prev_seq = []
        for t in range(T):
            # tile-aligned static row slice (B = 8 rows = one f32 sublane tile)
            pre = (jnp.dot(h, whh0, preferred_element_type=f32)
                   + gx_all[t * B:(t + 1) * B, :])
            h, c = lstm_cell(pre, c)
            prev_seq.append(h)

        # layers >= 1: K-fused — one (B,2H)@(2H,4H) matmul per step instead of two
        for layer in range(1, num_layers):
            w_ref, b_ref = lstm_refs[3 + 2 * (layer - 1): 3 + 2 * (layer - 1) + 2]
            w = w_ref[...]                                       # (2H, 4H) = [Wih ; Whh]
            b = b_ref[...]                                       # (1, 4H)
            h = jnp.zeros((B, H), f32)
            c = jnp.zeros((B, H), f32)
            cur = []
            for t in range(T):
                xh = jnp.concatenate([prev_seq[t], h], axis=1)   # (B, 2H) lane concat
                pre = jnp.dot(xh, w, preferred_element_type=f32) + b
                h, c = lstm_cell(pre, c)
                cur.append(h)
            prev_seq = cur
        h_last = h    # last layer's sequence is never written anywhere

        # ---- head: relu per branch (== relu(concat)) + split Linear3 + Softmax -------
        z1 = jnp.maximum(x1, 0.0)
        z2 = jnp.maximum(h_last, 0.0)
        logits = (jnp.dot(z1, w3a_ref[...], preferred_element_type=f32)
                  + jnp.dot(z2, w3b_ref[...], preferred_element_type=f32)
                  + b3_ref[...])
        m = jnp.max(logits, axis=1, keepdims=True)
        e = jnp.exp(logits - m)
        denom = jnp.sum(e, axis=1, keepdims=True)
        out_ref[...] = e * pl.reciprocal(denom, approx=True)     # EUP divide

    return kernel


# ---------------------------------------------------------------------------
# Wrapper: one pallas_call, whole-array VMEM blocks (working set << 1 MiB)
# ---------------------------------------------------------------------------
@jax.jit
def neural_net_forward(params, x, y):
    # x: (B, F) tabular features; y: (B, T, D) batch-first sequence.
    B = x.shape[0]
    T = y.shape[1]
    O = params["b3"].shape[-1]
    num_layers = len(params["lstm"])
    assert B % 8 == 0, "keep B a multiple of 8 so per-timestep slices stay tile-aligned"

    # time-major + flattened to (T*B, D). allow_input_fusion marks this operand so XLA
    # can fuse the transpose+reshape into the Pallas custom call (no separate launch).
    y_flat = jnp.transpose(y, (1, 0, 2)).reshape(T * B, y.shape[2])

    lstm_args = []
    for li, layer in enumerate(params["lstm"]):
        if li == 0:
            lstm_args += [layer["wih"], layer["whh"], layer["b"]]
        else:
            lstm_args += [layer["w"], layer["b"]]

    n_in = 11 + len(lstm_args)
    allow_fusion = [False] * n_in
    allow_fusion[1] = True                                       # y_flat

    vmem = pl.BlockSpec(memory_space=pltpu.MemorySpace.VMEM)
    return pl.pallas_call(
        make_fused_kernel(num_layers=num_layers, seq_len=T, batch=B),
        out_shape=jax.ShapeDtypeStruct((B, O), jnp.float32),
        in_specs=[vmem] * n_in,
        out_specs=vmem,
        compiler_params=pltpu.CompilerParams(allow_input_fusion=allow_fusion),
    )(x, y_flat,
      params["bn_gamma"], params["bn_beta"],
      params["w1"], params["b1"], params["w2"], params["b2"],
      params["w3_top"], params["w3_bot"], params["b3"],
      *lstm_args)


# ---------------------------------------------------------------------------
# Parameter construction: gate-PACKED LSTM weights (lane order [i|f|o|g]),
# K-fused weights for layers >= 1, pre-split W3. Raw PyTorch-order copies are
# kept under "lstm_raw" for the reference check.
# ---------------------------------------------------------------------------
def init_params(key, input_size, hidden_size, hidden_size2, output_size,
                input_size_lstm, hidden_size_lstm, num_layers):
    keys = jax.random.split(key, 8 + 4 * num_layers)
    k = iter(keys)
    s = 0.1

    def rnd(kk, shape):
        return s * jax.random.normal(kk, shape, dtype=jnp.float32)

    params = {
        "bn_gamma": jnp.ones((1, input_size), jnp.float32),
        "bn_beta": jnp.zeros((1, input_size), jnp.float32),
        "w1": rnd(next(k), (input_size, hidden_size)),
        "b1": rnd(next(k), (1, hidden_size)),
        "w2": rnd(next(k), (hidden_size, hidden_size2)),
        "b2": rnd(next(k), (1, hidden_size2)),
    }
    w3 = rnd(next(k), (hidden_size2 + hidden_size_lstm, output_size))
    params["w3_top"] = w3[:hidden_size2, :]      # multiplies the MLP-branch part of concat
    params["w3_bot"] = w3[hidden_size2:, :]      # multiplies the LSTM-branch part
    params["b3"] = rnd(next(k), (1, output_size))

    H = hidden_size_lstm

    def reorder(w):
        # PyTorch column blocks [i | f | g | o]  ->  kernel order [i | f | o | g]
        i, f, g, o = jnp.split(w, 4, axis=-1)
        return jnp.concatenate([i, f, o, g], axis=-1)

    params["lstm_raw"] = []   # PyTorch layout (reference)
    params["lstm"] = []       # packed / K-fused (kernel)
    for layer in range(num_layers):
        d_in = input_size_lstm if layer == 0 else H
        w_ih = rnd(next(k), (d_in, 4 * H))       # columns [i|f|g|o]
        w_hh = rnd(next(k), (H, 4 * H))
        b_ih = rnd(next(k), (1, 4 * H))
        b_hh = rnd(next(k), (1, 4 * H))
        b = b_ih + b_hh                          # PyTorch adds both biases
        params["lstm_raw"].append({"w_ih": w_ih, "w_hh": w_hh, "b": b})

        wih_p, whh_p, b_p = reorder(w_ih), reorder(w_hh), reorder(b)
        if layer == 0:
            params["lstm"].append({"wih": wih_p, "whh": whh_p, "b": b_p})
        else:
            params["lstm"].append({"w": jnp.concatenate([wih_p, whh_p], axis=0),  # (2H,4H)
                                   "b": b_p})
    return params


# ---------------------------------------------------------------------------
# Pure-JAX reference (mirrors the PyTorch forward) for a correctness check
# ---------------------------------------------------------------------------
def reference_forward(params, x, y):
    hp = jax.lax.Precision.HIGHEST
    mean = jnp.mean(x, axis=0, keepdims=True)
    var = jnp.mean((x - mean) ** 2, axis=0, keepdims=True)
    xn = (x - mean) / jnp.sqrt(var + EPS)
    xn = xn * params["bn_gamma"] + params["bn_beta"]
    h1 = jnp.maximum(jnp.dot(xn, params["w1"], precision=hp) + params["b1"], 0.0)
    x1 = jnp.dot(h1, params["w2"], precision=hp) + params["b2"]

    seq = jnp.maximum(y, 0.0)                               # (B, T, D)
    B, T, _ = seq.shape
    for layer in params["lstm_raw"]:
        w_ih, w_hh, b = layer["w_ih"], layer["w_hh"], layer["b"]
        H = w_hh.shape[0]
        h = jnp.zeros((B, H), jnp.float32)
        c = jnp.zeros((B, H), jnp.float32)
        outs = []
        for t in range(T):
            x_t = seq[:, t, :]
            pre = (jnp.dot(x_t, w_ih, precision=hp)
                   + jnp.dot(h, w_hh, precision=hp) + b)    # [i|f|g|o]
            i = jax.nn.sigmoid(pre[:, :H])
            f = jax.nn.sigmoid(pre[:, H:2 * H])
            g_ = jnp.tanh(pre[:, 2 * H:3 * H])
            o = jax.nn.sigmoid(pre[:, 3 * H:])
            c = f * c + i * g_
            h = o * jnp.tanh(c)
            outs.append(h)
        seq = jnp.stack(outs, axis=1)
    x2 = seq[:, -1, :]
    z = jnp.maximum(jnp.concatenate([x1, x2], axis=1), 0.0)
    w3 = jnp.concatenate([params["w3_top"], params["w3_bot"]], axis=0)
    logits = jnp.dot(z, w3, precision=hp) + params["b3"]
    return jax.nn.softmax(logits, axis=1)


if __name__ == "__main__":
    # Small, module-consistent shapes.
    batch = 8
    input_size = 16          # len(content_list)
    hidden_size = 32         # input_size * hs1_mult (hs1_mult=2)
    hidden_size2 = 24        # input_size + hs2_add (hs2_add=8)
    output_size = 4          # len(samples)
    input_size_lstm = 10
    hidden_size_lstm = 16
    num_layers = 2
    seq_len = 8

    key = jax.random.PRNGKey(0)
    kx, ky, kp = jax.random.split(key, 3)
    x = jax.random.normal(kx, (batch, input_size), dtype=jnp.float32)
    y = jax.random.normal(ky, (batch, seq_len, input_size_lstm), dtype=jnp.float32)

    params = init_params(kp, input_size, hidden_size, hidden_size2, output_size,
                         input_size_lstm, hidden_size_lstm, num_layers)

    out = neural_net_forward(params, x, y)
    out = jax.block_until_ready(out)

    assert out.shape == (batch, output_size)
    # softmax rows sum to 1 (approx reciprocal in the kernel -> modest tolerance)
    assert bool(jnp.all(jnp.abs(jnp.sum(out, axis=1) - 1.0) < 2e-3))
    # matches the pure-JAX reference of the PyTorch forward (tolerance covers MXU f32
    # passes + the EUP approximate reciprocal in the softmax tail)
    ref = jax.block_until_ready(reference_forward(params, x, y))
    assert bool(jnp.allclose(out, ref, atol=2e-3, rtol=2e-3)), "mismatch vs reference"
    print("KERNEL_OK")
</pallas_src>

<mosaic_0001>
module attributes {stable_mosaic.version = 11 : i64} {
  func.func @kernel(%arg0: memref<8x16xf32, #tpu.memory_space<vmem>>, %arg1: memref<64x10xf32, #tpu.memory_space<vmem>>, %arg2: memref<1x16xf32, #tpu.memory_space<vmem>>, %arg3: memref<1x16xf32, #tpu.memory_space<vmem>>, %arg4: memref<16x32xf32, #tpu.memory_space<vmem>>, %arg5: memref<1x32xf32, #tpu.memory_space<vmem>>, %arg6: memref<32x24xf32, #tpu.memory_space<vmem>>, %arg7: memref<1x24xf32, #tpu.memory_space<vmem>>, %arg8: memref<24x4xf32, #tpu.memory_space<vmem>>, %arg9: memref<16x4xf32, #tpu.memory_space<vmem>>, %arg10: memref<1x4xf32, #tpu.memory_space<vmem>>, %arg11: memref<10x64xf32, #tpu.memory_space<vmem>>, %arg12: memref<16x64xf32, #tpu.memory_space<vmem>>, %arg13: memref<1x64xf32, #tpu.memory_space<vmem>>, %arg14: memref<32x64xf32, #tpu.memory_space<vmem>>, %arg15: memref<1x64xf32, #tpu.memory_space<vmem>>, %arg16: memref<8x4xf32, #tpu.memory_space<vmem>>) attributes {dimension_semantics = [], scalar_prefetch = 0 : i64, scratch_operands = 0 : i64, tpu.core_type = #tpu.core_type<tc>} {
    %c0 = arith.constant 0 : index
    %c0_0 = arith.constant 0 : index
    %0 = vector.load %arg0[%c0, %c0_0] : memref<8x16xf32, #tpu.memory_space<vmem>>, vector<8x16xf32>
    %cst = arith.constant dense<0.000000e+00> : vector<16xf32>
    %1 = vector.multi_reduction <add>, %0, %cst [0] : vector<8x16xf32> to vector<16xf32>
    %2 = vector.shape_cast %1 : vector<16xf32> to vector<1x16xf32>
    %cst_1 = arith.constant 8.000000e+00 : f32
    %3 = vector.broadcast %cst_1 : f32 to vector<1x16xf32>
    %4 = arith.divf %2, %3 : vector<1x16xf32>
    %5 = vector.broadcast %4 : vector<1x16xf32> to vector<8x16xf32>
    %6 = arith.subf %0, %5 : vector<8x16xf32>
    %7 = arith.mulf %6, %6 : vector<8x16xf32>
    %cst_2 = arith.constant dense<0.000000e+00> : vector<16xf32>
    %8 = vector.multi_reduction <add>, %7, %cst_2 [0] : vector<8x16xf32> to vector<16xf32>
    %9 = vector.shape_cast %8 : vector<16xf32> to vector<1x16xf32>
    %cst_3 = arith.constant 8.000000e+00 : f32
    %10 = vector.broadcast %cst_3 : f32 to vector<1x16xf32>
    %11 = arith.divf %9, %10 : vector<1x16xf32>
    %12 = vector.broadcast %4 : vector<1x16xf32> to vector<8x16xf32>
    %13 = arith.subf %0, %12 : vector<8x16xf32>
    %cst_4 = arith.constant 9.99999974E-6 : f32
    %14 = vector.broadcast %cst_4 : f32 to vector<1x16xf32>
    %15 = arith.addf %11, %14 : vector<1x16xf32>
    %16 = math.rsqrt %15 : vector<1x16xf32>
    %17 = vector.broadcast %16 : vector<1x16xf32> to vector<8x16xf32>
    %18 = arith.mulf %13, %17 : vector<8x16xf32>
    %c0_5 = arith.constant 0 : index
    %c0_6 = arith.constant 0 : index
    %19 = vector.load %arg2[%c0_5, %c0_6] : memref<1x16xf32, #tpu.memory_space<vmem>>, vector<1x16xf32>
    %20 = vector.broadcast %19 : vector<1x16xf32> to vector<8x16xf32>
    %21 = arith.mulf %18, %20 : vector<8x16xf32>
    %c0_7 = arith.constant 0 : index
    %c0_8 = arith.constant 0 : index
    %22 = vector.load %arg3[%c0_7, %c0_8] : memref<1x16xf32, #tpu.memory_space<vmem>>, vector<1x16xf32>
    %23 = vector.broadcast %22 : vector<1x16xf32> to vector<8x16xf32>
    %24 = arith.addf %21, %23 : vector<8x16xf32>
    %c0_9 = arith.constant 0 : index
    %c0_10 = arith.constant 0 : index
    %25 = vector.load %arg4[%c0_9, %c0_10] : memref<16x32xf32, #tpu.memory_space<vmem>>, vector<16x32xf32>
    %cst_11 = arith.constant dense<0.000000e+00> : vector<8x32xf32>
    %26 = tpu.matmul %24, %25, %cst_11 {dimension_numbers = #tpu.dot_dimension_numbers<[1], [0], [0], [1], [0, 0, 1, 1], [], []>} : vector<8x16xf32>, vector<16x32xf32>, vector<8x32xf32> -> vector<8x32xf32>
    %c0_12 = arith.constant 0 : index
    %c0_13 = arith.constant 0 : index
    %27 = vector.load %arg5[%c0_12, %c0_13] : memref<1x32xf32, #tpu.memory_space<vmem>>, vector<1x32xf32>
    %28 = vector.broadcast %27 : vector<1x32xf32> to vector<8x32xf32>
    %29 = arith.addf %26, %28 : vector<8x32xf32>
    %cst_14 = arith.constant 0.000000e+00 : f32
    %30 = vector.broadcast %cst_14 : f32 to vector<8x32xf32>
    %31 = arith.maximumf %29, %30 : vector<8x32xf32>
    %c0_15 = arith.constant 0 : index
    %c0_16 = arith.constant 0 : index
    %32 = vector.load %arg6[%c0_15, %c0_16] : memref<32x24xf32, #tpu.memory_space<vmem>>, vector<32x24xf32>
    %cst_17 = arith.constant dense<0.000000e+00> : vector<8x24xf32>
    %33 = tpu.matmul %31, %32, %cst_17 {dimension_numbers = #tpu.dot_dimension_numbers<[1], [0], [0], [1], [0, 0, 1, 1], [], []>} : vector<8x32xf32>, vector<32x24xf32>, vector<8x24xf32> -> vector<8x24xf32>
    %c0_18 = arith.constant 0 : index
    %c0_19 = arith.constant 0 : index
    %34 = vector.load %arg7[%c0_18, %c0_19] : memref<1x24xf32, #tpu.memory_space<vmem>>, vector<1x24xf32>
    %35 = vector.broadcast %34 : vector<1x24xf32> to vector<8x24xf32>
    %36 = arith.addf %33, %35 : vector<8x24xf32>
    %c0_20 = arith.constant 0 : index
    %c0_21 = arith.constant 0 : index
    %37 = vector.load %arg1[%c0_20, %c0_21] : memref<64x10xf32, #tpu.memory_space<vmem>>, vector<64x10xf32>
    %cst_22 = arith.constant 0.000000e+00 : f32
    %38 = vector.broadcast %cst_22 : f32 to vector<64x10xf32>
    %39 = arith.maximumf %37, %38 : vector<64x10xf32>
    %c0_23 = arith.constant 0 : index
    %c0_24 = arith.constant 0 : index
    %40 = vector.load %arg11[%c0_23, %c0_24] : memref<10x64xf32, #tpu.memory_space<vmem>>, vector<10x64xf32>
    %cst_25 = arith.constant dense<0.000000e+00> : vector<64x64xf32>
    %41 = tpu.matmul %39, %40, %cst_25 {dimension_numbers = #tpu.dot_dimension_numbers<[1], [0], [0], [1], [0, 0, 1, 1], [], []>} : vector<64x10xf32>, vector<10x64xf32>, vector<64x64xf32> -> vector<64x64xf32>
    %c0_26 = arith.constant 0 : index
    %c0_27 = arith.constant 0 : index
    %42 = vector.load %arg13[%c0_26, %c0_27] : memref<1x64xf32, #tpu.memory_space<vmem>>, vector<1x64xf32>
    %43 = vector.broadcast %42 : vector<1x64xf32> to vector<64x64xf32>
    %44 = arith.addf %41, %43 : vector<64x64xf32>
    %c0_28 = arith.constant 0 : index
    %c0_29 = arith.constant 0 : index
    %45 = vector.load %arg12[%c0_28, %c0_29] : memref<16x64xf32, #tpu.memory_space<vmem>>, vector<16x64xf32>
    %cst_30 = arith.constant 0.000000e+00 : f32
    %46 = vector.broadcast %cst_30 : f32 to vector<8x16xf32>
    %cst_31 = arith.constant 0.000000e+00 : f32
    %47 = vector.broadcast %cst_31 : f32 to vector<8x16xf32>
    %cst_32 = arith.constant dense<0.000000e+00> : vector<8x64xf32>
    %48 = tpu.matmul %46, %45, %cst_32 {dimension_numbers = #tpu.dot_dimension_numbers<[1], [0], [0], [1], [0, 0, 1, 1], [], []>} : vector<8x16xf32>, vector<16x64xf32>, vector<8x64xf32> -> vector<8x64xf32>
    %49 = vector.extract_strided_slice %44 {offsets = [0, 0], sizes = [8, 64], strides = [1, 1]} : vector<64x64xf32> to vector<8x64xf32>
    %50 = arith.addf %48, %49 : vector<8x64xf32>
    %51 = vector.extract_strided_slice %50 {offsets = [0, 0], sizes = [8, 48], strides = [1, 1]} : vector<8x64xf32> to vector<8x48xf32>
    %52 = arith.negf %51 : vector<8x48xf32>
    %53 = math.exp %52 : vector<8x48xf32>
    %cst_33 = arith.constant 1.000000e+00 : f32
    %54 = vector.broadcast %cst_33 : f32 to vector<8x48xf32>
    %55 = arith.addf %54, %53 : vector<8x48xf32>
    %56 = arith.divf %54, %55 : vector<8x48xf32>
    %57 = vector.extract_strided_slice %50 {offsets = [0, 48], sizes = [8, 16], strides = [1, 1]} : vector<8x64xf32> to vector<8x16xf32>
    %58 = math.tanh %57 : vector<8x16xf32>
    %59 = vector.extract_strided_slice %56 {offsets = [0, 0], sizes = [8, 16], strides = [1, 1]} : vector<8x48xf32> to vector<8x16xf32>
    %60 = vector.extract_strided_slice %56 {offsets = [0, 16], sizes = [8, 16], strides = [1, 1]} : vector<8x48xf32> to vector<8x16xf32>
    %61 = vector.extract_strided_slice %56 {offsets = [0, 32], sizes = [8, 16], strides = [1, 1]} : vector<8x48xf32> to vector<8x16xf32>
    %62 = arith.mulf %60, %47 : vector<8x16xf32>
    %63 = arith.mulf %59, %58 : vector<8x16xf32>
    %64 = arith.addf %62, %63 : vector<8x16xf32>
    %65 = math.tanh %64 : vector<8x16xf32>
    %66 = arith.mulf %61, %65 : vector<8x16xf32>
    %cst_34 = arith.constant dense<0.000000e+00> : vector<8x64xf32>
    %67 = tpu.matmul %66, %45, %cst_34 {dimension_numbers = #tpu.dot_dimension_numbers<[1], [0], [0], [1], [0, 0, 1, 1], [], []>} : vector<8x16xf32>, vector<16x64xf32>, vector<8x64xf32> -> vector<8x64xf32>
    %68 = vector.extract_strided_slice %44 {offsets = [8, 0], sizes = [8, 64], strides = [1, 1]} : vector<64x64xf32> to vector<8x64xf32>
    %69 = arith.addf %67, %68 : vector<8x64xf32>
    %70 = vector.extract_strided_slice %69 {offsets = [0, 0], sizes = [8, 48], strides = [1, 1]} : vector<8x64xf32> to vector<8x48xf32>
    %71 = arith.negf %70 : vector<8x48xf32>
    %72 = math.exp %71 : vector<8x48xf32>
    %cst_35 = arith.constant 1.000000e+00 : f32
    %73 = vector.broadcast %cst_35 : f32 to vector<8x48xf32>
    %74 = arith.addf %73, %72 : vector<8x48xf32>
    %75 = arith.divf %73, %74 : vector<8x48xf32>
    %76 = vector.extract_strided_slice %69 {offsets = [0, 48], sizes = [8, 16], strides = [1, 1]} : vector<8x64xf32> to vector<8x16xf32>
    %77 = math.tanh %76 : vector<8x16xf32>
    %78 = vector.extract_strided_slice %75 {offsets = [0, 0], sizes = [8, 16], strides = [1, 1]} : vector<8x48xf32> to vector<8x16xf32>
    %79 = vector.extract_strided_slice %75 {offsets = [0, 16], sizes = [8, 16], strides = [1, 1]} : vector<8x48xf32> to vector<8x16xf32>
    %80 = vector.extract_strided_slice %75 {offsets = [0, 32], sizes = [8, 16], strides = [1, 1]} : vector<8x48xf32> to vector<8x16xf32>
    %81 = arith.mulf %79, %64 : vector<8x16xf32>
    %82 = arith.mulf %78, %77 : vector<8x16xf32>
    %83 = arith.addf %81, %82 : vector<8x16xf32>
    %84 = math.tanh %83 : vector<8x16xf32>
    %85 = arith.mulf %80, %84 : vector<8x16xf32>
    %cst_36 = arith.constant dense<0.000000e+00> : vector<8x64xf32>
    %86 = tpu.matmul %85, %45, %cst_36 {dimension_numbers = #tpu.dot_dimension_numbers<[1], [0], [0], [1], [0, 0, 1, 1], [], []>} : vector<8x16xf32>, vector<16x64xf32>, vector<8x64xf32> -> vector<8x64xf32>
    %87 = vector.extract_strided_slice %44 {offsets = [16, 0], sizes = [8, 64], strides = [1, 1]} : vector<64x64xf32> to vector<8x64xf32>
    %88 = arith.addf %86, %87 : vector<8x64xf32>
    %89 = vector.extract_strided_slice %88 {offsets = [0, 0], sizes = [8, 48], strides = [1, 1]} : vector<8x64xf32> to vector<8x48xf32>
    %90 = arith.negf %89 : vector<8x48xf32>
    %91 = math.exp %90 : vector<8x48xf32>
    %cst_37 = arith.constant 1.000000e+00 : f32
    %92 = vector.broadcast %cst_37 : f32 to vector<8x48xf32>
    %93 = arith.addf %92, %91 : vector<8x48xf32>
    %94 = arith.divf %92, %93 : vector<8x48xf32>
    %95 = vector.extract_strided_slice %88 {offsets = [0, 48], sizes = [8, 16], strides = [1, 1]} : vector<8x64xf32> to vector<8x16xf32>
    %96 = math.tanh %95 : vector<8x16xf32>
    %97 = vector.extract_strided_slice %94 {offsets = [0, 0], sizes = [8, 16], strides = [1, 1]} : vector<8x48xf32> to vector<8x16xf32>
    %98 = vector.extract_strided_slice %94 {offsets = [0, 16], sizes = [8, 16], strides = [1, 1]} : vector<8x48xf32> to vector<8x16xf32>
    %99 = vector.extract_strided_slice %94 {offsets = [0, 32], sizes = [8, 16], strides = [1, 1]} : vector<8x48xf32> to vector<8x16xf32>
    %100 = arith.mulf %98, %83 : vector<8x16xf32>
    %101 = arith.mulf %97, %96 : vector<8x16xf32>
    %102 = arith.addf %100, %101 : vector<8x16xf32>
    %103 = math.tanh %102 : vector<8x16xf32>
    %104 = arith.mulf %99, %103 : vector<8x16xf32>
    %cst_38 = arith.constant dense<0.000000e+00> : vector<8x64xf32>
    %105 = tpu.matmul %104, %45, %cst_38 {dimension_numbers = #tpu.dot_dimension_numbers<[1], [0], [0], [1], [0, 0, 1, 1], [], []>} : vector<8x16xf32>, vector<16x64xf32>, vector<8x64xf32> -> vector<8x64xf32>
    %106 = vector.extract_strided_slice %44 {offsets = [24, 0], sizes = [8, 64], strides = [1, 1]} : vector<64x64xf32> to vector<8x64xf32>
    %107 = arith.addf %105, %106 : vector<8x64xf32>
    %108 = vector.extract_strided_slice %107 {offsets = [0, 0], sizes = [8, 48], strides = [1, 1]} : vector<8x64xf32> to vector<8x48xf32>
    %109 = arith.negf %108 : vector<8x48xf32>
    %110 = math.exp %109 : vector<8x48xf32>
    %cst_39 = arith.constant 1.000000e+00 : f32
    %111 = vector.broadcast %cst_39 : f32 to vector<8x48xf32>
    %112 = arith.addf %111, %110 : vector<8x48xf32>
    %113 = arith.divf %111, %112 : vector<8x48xf32>
    %114 = vector.extract_strided_slice %107 {offsets = [0, 48], sizes = [8, 16], strides = [1, 1]} : vector<8x64xf32> to vector<8x16xf32>
    %115 = math.tanh %114 : vector<8x16xf32>
    %116 = vector.extract_strided_slice %113 {offsets = [0, 0], sizes = [8, 16], strides = [1, 1]} : vector<8x48xf32> to vector<8x16xf32>
    %117 = vector.extract_strided_slice %113 {offsets = [0, 16], sizes = [8, 16], strides = [1, 1]} : vector<8x48xf32> to vector<8x16xf32>
    %118 = vector.extract_strided_slice %113 {offsets = [0, 32], sizes = [8, 16], strides = [1, 1]} : vector<8x48xf32> to vector<8x16xf32>
    %119 = arith.mulf %117, %102 : vector<8x16xf32>
    %120 = arith.mulf %116, %115 : vector<8x16xf32>
    %121 = arith.addf %119, %120 : vector<8x16xf32>
    %122 = math.tanh %121 : vector<8x16xf32>
    %123 = arith.mulf %118, %122 : vector<8x16xf32>
    %cst_40 = arith.constant dense<0.000000e+00> : vector<8x64xf32>
    %124 = tpu.matmul %123, %45, %cst_40 {dimension_numbers = #tpu.dot_dimension_numbers<[1], [0], [0], [1], [0, 0, 1, 1], [], []>} : vector<8x16xf32>, vector<16x64xf32>, vector<8x64xf32> -> vector<8x64xf32>
    %125 = vector.extract_strided_slice %44 {offsets = [32, 0], sizes = [8, 64], strides = [1, 1]} : vector<64x64xf32> to vector<8x64xf32>
    %126 = arith.addf %124, %125 : vector<8x64xf32>
    %127 = vector.extract_strided_slice %126 {offsets = [0, 0], sizes = [8, 48], strides = [1, 1]} : vector<8x64xf32> to vector<8x48xf32>
    %128 = arith.negf %127 : vector<8x48xf32>
    %129 = math.exp %128 : vector<8x48xf32>
    %cst_41 = arith.constant 1.000000e+00 : f32
    %130 = vector.broadcast %cst_41 : f32 to vector<8x48xf32>
    %131 = arith.addf %130, %129 : vector<8x48xf32>
    %132 = arith.divf %130, %131 : vector<8x48xf32>
    %133 = vector.extract_strided_slice %126 {offsets = [0, 48], sizes = [8, 16], strides = [1, 1]} : vector<8x64xf32> to vector<8x16xf32>
    %134 = math.tanh %133 : vector<8x16xf32>
    %135 = vector.extract_strided_slice %132 {offsets = [0, 0], sizes = [8, 16], strides = [1, 1]} : vector<8x48xf32> to vector<8x16xf32>
    %136 = vector.extract_strided_slice %132 {offsets = [0, 16], sizes = [8, 16], strides = [1, 1]} : vector<8x48xf32> to vector<8x16xf32>
    %137 = vector.extract_strided_slice %132 {offsets = [0, 32], sizes = [8, 16], strides = [1, 1]} : vector<8x48xf32> to vector<8x16xf32>
    %138 = arith.mulf %136, %121 : vector<8x16xf32>
    %139 = arith.mulf %135, %134 : vector<8x16xf32>
    %140 = arith.addf %138, %139 : vector<8x16xf32>
    %141 = math.tanh %140 : vector<8x16xf32>
    %142 = arith.mulf %137, %141 : vector<8x16xf32>
    %cst_42 = arith.constant dense<0.000000e+00> : vector<8x64xf32>
    %143 = tpu.matmul %142, %45, %cst_42 {dimension_numbers = #tpu.dot_dimension_numbers<[1], [0], [0], [1], [0, 0, 1, 1], [], []>} : vector<8x16xf32>, vector<16x64xf32>, vector<8x64xf32> -> vector<8x64xf32>
    %144 = vector.extract_strided_slice %44 {offsets = [40, 0], sizes = [8, 64], strides = [1, 1]} : vector<64x64xf32> to vector<8x64xf32>
    %145 = arith.addf %143, %144 : vector<8x64xf32>
    %146 = vector.extract_strided_slice %145 {offsets = [0, 0], sizes = [8, 48], strides = [1, 1]} : vector<8x64xf32> to vector<8x48xf32>
    %147 = arith.negf %146 : vector<8x48xf32>
    %148 = math.exp %147 : vector<8x48xf32>
    %cst_43 = arith.constant 1.000000e+00 : f32
    %149 = vector.broadcast %cst_43 : f32 to vector<8x48xf32>
    %150 = arith.addf %149, %148 : vector<8x48xf32>
    %151 = arith.divf %149, %150 : vector<8x48xf32>
    %152 = vector.extract_strided_slice %145 {offsets = [0, 48], sizes = [8, 16], strides = [1, 1]} : vector<8x64xf32> to vector<8x16xf32>
    %153 = math.tanh %152 : vector<8x16xf32>
    %154 = vector.extract_strided_slice %151 {offsets = [0, 0], sizes = [8, 16], strides = [1, 1]} : vector<8x48xf32> to vector<8x16xf32>
    %155 = vector.extract_strided_slice %151 {offsets = [0, 16], sizes = [8, 16], strides = [1, 1]} : vector<8x48xf32> to vector<8x16xf32>
    %156 = vector.extract_strided_slice %151 {offsets = [0, 32], sizes = [8, 16], strides = [1, 1]} : vector<8x48xf32> to vector<8x16xf32>
    %157 = arith.mulf %155, %140 : vector<8x16xf32>
    %158 = arith.mulf %154, %153 : vector<8x16xf32>
    %159 = arith.addf %157, %158 : vector<8x16xf32>
    %160 = math.tanh %159 : vector<8x16xf32>
    %161 = arith.mulf %156, %160 : vector<8x16xf32>
    %cst_44 = arith.constant dense<0.000000e+00> : vector<8x64xf32>
    %162 = tpu.matmul %161, %45, %cst_44 {dimension_numbers = #tpu.dot_dimension_numbers<[1], [0], [0], [1], [0, 0, 1, 1], [], []>} : vector<8x16xf32>, vector<16x64xf32>, vector<8x64xf32> -> vector<8x64xf32>
    %163 = vector.extract_strided_slice %44 {offsets = [48, 0], sizes = [8, 64], strides = [1, 1]} : vector<64x64xf32> to vector<8x64xf32>
    %164 = arith.addf %162, %163 : vector<8x64xf32>
    %165 = vector.extract_strided_slice %164 {offsets = [0, 0], sizes = [8, 48], strides = [1, 1]} : vector<8x64xf32> to vector<8x48xf32>
    %166 = arith.negf %165 : vector<8x48xf32>
    %167 = math.exp %166 : vector<8x48xf32>
    %cst_45 = arith.constant 1.000000e+00 : f32
    %168 = vector.broadcast %cst_45 : f32 to vector<8x48xf32>
    %169 = arith.addf %168, %167 : vector<8x48xf32>
    %170 = arith.divf %168, %169 : vector<8x48xf32>
    %171 = vector.extract_strided_slice %164 {offsets = [0, 48], sizes = [8, 16], strides = [1, 1]} : vector<8x64xf32> to vector<8x16xf32>
    %172 = math.tanh %171 : vector<8x16xf32>
    %173 = vector.extract_strided_slice %170 {offsets = [0, 0], sizes = [8, 16], strides = [1, 1]} : vector<8x48xf32> to vector<8x16xf32>
    %174 = vector.extract_strided_slice %170 {offsets = [0, 16], sizes = [8, 16], strides = [1, 1]} : vector<8x48xf32> to vector<8x16xf32>
    %175 = vector.extract_strided_slice %170 {offsets = [0, 32], sizes = [8, 16], strides = [1, 1]} : vector<8x48xf32> to vector<8x16xf32>
    %176 = arith.mulf %174, %159 : vector<8x16xf32>
    %177 = arith.mulf %173, %172 : vector<8x16xf32>
    %178 = arith.addf %176, %177 : vector<8x16xf32>
    %179 = math.tanh %178 : vector<8x16xf32>
    %180 = arith.mulf %175, %179 : vector<8x16xf32>
    %cst_46 = arith.constant dense<0.000000e+00> : vector<8x64xf32>
    %181 = tpu.matmul %180, %45, %cst_46 {dimension_numbers = #tpu.dot_dimension_numbers<[1], [0], [0], [1], [0, 0, 1, 1], [], []>} : vector<8x16xf32>, vector<16x64xf32>, vector<8x64xf32> -> vector<8x64xf32>
    %182 = vector.extract_strided_slice %44 {offsets = [56, 0], sizes = [8, 64], strides = [1, 1]} : vector<64x64xf32> to vector<8x64xf32>
    %183 = arith.addf %181, %182 : vector<8x64xf32>
    %184 = vector.extract_strided_slice %183 {offsets = [0, 0], sizes = [8, 48], strides = [1, 1]} : vector<8x64xf32> to vector<8x48xf32>
    %185 = arith.negf %184 : vector<8x48xf32>
    %186 = math.exp %185 : vector<8x48xf32>
    %cst_47 = arith.constant 1.000000e+00 : f32
    %187 = vector.broadcast %cst_47 : f32 to vector<8x48xf32>
    %188 = arith.addf %187, %186 : vector<8x48xf32>
    %189 = arith.divf %187, %188 : vector<8x48xf32>
    %190 = vector.extract_strided_slice %183 {offsets = [0, 48], sizes = [8, 16], strides = [1, 1]} : vector<8x64xf32> to vector<8x16xf32>
    %191 = math.tanh %190 : vector<8x16xf32>
    %192 = vector.extract_strided_slice %189 {offsets = [0, 0], sizes = [8, 16], strides = [1, 1]} : vector<8x48xf32> to vector<8x16xf32>
    %193 = vector.extract_strided_slice %189 {offsets = [0, 16], sizes = [8, 16], strides = [1, 1]} : vector<8x48xf32> to vector<8x16xf32>
    %194 = vector.extract_strided_slice %189 {offsets = [0, 32], sizes = [8, 16], strides = [1, 1]} : vector<8x48xf32> to vector<8x16xf32>
    %195 = arith.mulf %193, %178 : vector<8x16xf32>
    %196 = arith.mulf %192, %191 : vector<8x16xf32>
    %197 = arith.addf %195, %196 : vector<8x16xf32>
    %198 = math.tanh %197 : vector<8x16xf32>
    %199 = arith.mulf %194, %198 : vector<8x16xf32>
    %c0_48 = arith.constant 0 : index
    %c0_49 = arith.constant 0 : index
    %200 = vector.load %arg14[%c0_48, %c0_49] : memref<32x64xf32, #tpu.memory_space<vmem>>, vector<32x64xf32>
    %c0_50 = arith.constant 0 : index
    %c0_51 = arith.constant 0 : index
    %201 = vector.load %arg15[%c0_50, %c0_51] : memref<1x64xf32, #tpu.memory_space<vmem>>, vector<1x64xf32>
    %cst_52 = arith.constant 0.000000e+00 : f32
    %202 = vector.broadcast %cst_52 : f32 to vector<8x16xf32>
    %cst_53 = arith.constant 0.000000e+00 : f32
    %203 = vector.broadcast %cst_53 : f32 to vector<8x16xf32>
    %204 = tpu.concatenate %66, %202 in 1 : vector<8x16xf32>, vector<8x16xf32> -> vector<8x32xf32>
    %cst_54 = arith.constant dense<0.000000e+00> : vector<8x64xf32>
    %205 = tpu.matmul %204, %200, %cst_54 {dimension_numbers = #tpu.dot_dimension_numbers<[1], [0], [0], [1], [0, 0, 1, 1], [], []>} : vector<8x32xf32>, vector<32x64xf32>, vector<8x64xf32> -> vector<8x64xf32>
    %206 = vector.broadcast %201 : vector<1x64xf32> to vector<8x64xf32>
    %207 = arith.addf %205, %206 : vector<8x64xf32>
    %208 = vector.extract_strided_slice %207 {offsets = [0, 0], sizes = [8, 48], strides = [1, 1]} : vector<8x64xf32> to vector<8x48xf32>
    %209 = arith.negf %208 : vector<8x48xf32>
    %210 = math.exp %209 : vector<8x48xf32>
    %cst_55 = arith.constant 1.000000e+00 : f32
    %211 = vector.broadcast %cst_55 : f32 to vector<8x48xf32>
    %212 = arith.addf %211, %210 : vector<8x48xf32>
    %213 = arith.divf %211, %212 : vector<8x48xf32>
    %214 = vector.extract_strided_slice %207 {offsets = [0, 48], sizes = [8, 16], strides = [1, 1]} : vector<8x64xf32> to vector<8x16xf32>
    %215 = math.tanh %214 : vector<8x16xf32>
    %216 = vector.extract_strided_slice %213 {offsets = [0, 0], sizes = [8, 16], strides = [1, 1]} : vector<8x48xf32> to vector<8x16xf32>
    %217 = vector.extract_strided_slice %213 {offsets = [0, 16], sizes = [8, 16], strides = [1, 1]} : vector<8x48xf32> to vector<8x16xf32>
    %218 = vector.extract_strided_slice %213 {offsets = [0, 32], sizes = [8, 16], strides = [1, 1]} : vector<8x48xf32> to vector<8x16xf32>
    %219 = arith.mulf %217, %203 : vector<8x16xf32>
    %220 = arith.mulf %216, %215 : vector<8x16xf32>
    %221 = arith.addf %219, %220 : vector<8x16xf32>
    %222 = math.tanh %221 : vector<8x16xf32>
    %223 = arith.mulf %218, %222 : vector<8x16xf32>
    %224 = tpu.concatenate %85, %223 in 1 : vector<8x16xf32>, vector<8x16xf32> -> vector<8x32xf32>
    %cst_56 = arith.constant dense<0.000000e+00> : vector<8x64xf32>
    %225 = tpu.matmul %224, %200, %cst_56 {dimension_numbers = #tpu.dot_dimension_numbers<[1], [0], [0], [1], [0, 0, 1, 1], [], []>} : vector<8x32xf32>, vector<32x64xf32>, vector<8x64xf32> -> vector<8x64xf32>
    %226 = vector.broadcast %201 : vector<1x64xf32> to vector<8x64xf32>
    %227 = arith.addf %225, %226 : vector<8x64xf32>
    %228 = vector.extract_strided_slice %227 {offsets = [0, 0], sizes = [8, 48], strides = [1, 1]} : vector<8x64xf32> to vector<8x48xf32>
    %229 = arith.negf %228 : vector<8x48xf32>
    %230 = math.exp %229 : vector<8x48xf32>
    %cst_57 = arith.constant 1.000000e+00 : f32
    %231 = vector.broadcast %cst_57 : f32 to vector<8x48xf32>
    %232 = arith.addf %231, %230 : vector<8x48xf32>
    %233 = arith.divf %231, %232 : vector<8x48xf32>
    %234 = vector.extract_strided_slice %227 {offsets = [0, 48], sizes = [8, 16], strides = [1, 1]} : vector<8x64xf32> to vector<8x16xf32>
    %235 = math.tanh %234 : vector<8x16xf32>
    %236 = vector.extract_strided_slice %233 {offsets = [0, 0], sizes = [8, 16], strides = [1, 1]} : vector<8x48xf32> to vector<8x16xf32>
    %237 = vector.extract_strided_slice %233 {offsets = [0, 16], sizes = [8, 16], strides = [1, 1]} : vector<8x48xf32> to vector<8x16xf32>
    %238 = vector.extract_strided_slice %233 {offsets = [0, 32], sizes = [8, 16], strides = [1, 1]} : vector<8x48xf32> to vector<8x16xf32>
    %239 = arith.mulf %237, %221 : vector<8x16xf32>
    %240 = arith.mulf %236, %235 : vector<8x16xf32>
    %241 = arith.addf %239, %240 : vector<8x16xf32>
    %242 = math.tanh %241 : vector<8x16xf32>
    %243 = arith.mulf %238, %242 : vector<8x16xf32>
    %244 = tpu.concatenate %104, %243 in 1 : vector<8x16xf32>, vector<8x16xf32> -> vector<8x32xf32>
    %cst_58 = arith.constant dense<0.000000e+00> : vector<8x64xf32>
    %245 = tpu.matmul %244, %200, %cst_58 {dimension_numbers = #tpu.dot_dimension_numbers<[1], [0], [0], [1], [0, 0, 1, 1], [], []>} : vector<8x32xf32>, vector<32x64xf32>, vector<8x64xf32> -> vector<8x64xf32>
    %246 = vector.broadcast %201 : vector<1x64xf32> to vector<8x64xf32>
    %247 = arith.addf %245, %246 : vector<8x64xf32>
    %248 = vector.extract_strided_slice %247 {offsets = [0, 0], sizes = [8, 48], strides = [1, 1]} : vector<8x64xf32> to vector<8x48xf32>
    %249 = arith.negf %248 : vector<8x48xf32>
    %250 = math.exp %249 : vector<8x48xf32>
    %cst_59 = arith.constant 1.000000e+00 : f32
    %251 = vector.broadcast %cst_59 : f32 to vector<8x48xf32>
    %252 = arith.addf %251, %250 : vector<8x48xf32>
    %253 = arith.divf %251, %252 : vector<8x48xf32>
    %254 = vector.extract_strided_slice %247 {offsets = [0, 48], sizes = [8, 16], strides = [1, 1]} : vector<8x64xf32> to vector<8x16xf32>
    %255 = math.tanh %254 : vector<8x16xf32>
    %256 = vector.extract_strided_slice %253 {offsets = [0, 0], sizes = [8, 16], strides = [1, 1]} : vector<8x48xf32> to vector<8x16xf32>
    %257 = vector.extract_strided_slice %253 {offsets = [0, 16], sizes = [8, 16], strides = [1, 1]} : vector<8x48xf32> to vector<8x16xf32>
    %258 = vector.extract_strided_slice %253 {offsets = [0, 32], sizes = [8, 16], strides = [1, 1]} : vector<8x48xf32> to vector<8x16xf32>
    %259 = arith.mulf %257, %241 : vector<8x16xf32>
    %260 = arith.mulf %256, %255 : vector<8x16xf32>
    %261 = arith.addf %259, %260 : vector<8x16xf32>
    %262 = math.tanh %261 : vector<8x16xf32>
    %263 = arith.mulf %258, %262 : vector<8x16xf32>
    %264 = tpu.concatenate %123, %263 in 1 : vector<8x16xf32>, vector<8x16xf32> -> vector<8x32xf32>
    %cst_60 = arith.constant dense<0.000000e+00> : vector<8x64xf32>
    %265 = tpu.matmul %264, %200, %cst_60 {dimension_numbers = #tpu.dot_dimension_numbers<[1], [0], [0], [1], [0, 0, 1, 1], [], []>} : vector<8x32xf32>, vector<32x64xf32>, vector<8x64xf32> -> vector<8x64xf32>
    %266 = vector.broadcast %201 : vector<1x64xf32> to vector<8x64xf32>
    %267 = arith.addf %265, %266 : vector<8x64xf32>
    %268 = vector.extract_strided_slice %267 {offsets = [0, 0], sizes = [8, 48], strides = [1, 1]} : vector<8x64xf32> to vector<8x48xf32>
    %269 = arith.negf %268 : vector<8x48xf32>
    %270 = math.exp %269 : vector<8x48xf32>
    %cst_61 = arith.constant 1.000000e+00 : f32
    %271 = vector.broadcast %cst_61 : f32 to vector<8x48xf32>
    %272 = arith.addf %271, %270 : vector<8x48xf32>
    %273 = arith.divf %271, %272 : vector<8x48xf32>
    %274 = vector.extract_strided_slice %267 {offsets = [0, 48], sizes = [8, 16], strides = [1, 1]} : vector<8x64xf32> to vector<8x16xf32>
    %275 = math.tanh %274 : vector<8x16xf32>
    %276 = vector.extract_strided_slice %273 {offsets = [0, 0], sizes = [8, 16], strides = [1, 1]} : vector<8x48xf32> to vector<8x16xf32>
    %277 = vector.extract_strided_slice %273 {offsets = [0, 16], sizes = [8, 16], strides = [1, 1]} : vector<8x48xf32> to vector<8x16xf32>
    %278 = vector.extract_strided_slice %273 {offsets = [0, 32], sizes = [8, 16], strides = [1, 1]} : vector<8x48xf32> to vector<8x16xf32>
    %279 = arith.mulf %277, %261 : vector<8x16xf32>
    %280 = arith.mulf %276, %275 : vector<8x16xf32>
    %281 = arith.addf %279, %280 : vector<8x16xf32>
    %282 = math.tanh %281 : vector<8x16xf32>
    %283 = arith.mulf %278, %282 : vector<8x16xf32>
    %284 = tpu.concatenate %142, %283 in 1 : vector<8x16xf32>, vector<8x16xf32> -> vector<8x32xf32>
    %cst_62 = arith.constant dense<0.000000e+00> : vector<8x64xf32>
    %285 = tpu.matmul %284, %200, %cst_62 {dimension_numbers = #tpu.dot_dimension_numbers<[1], [0], [0], [1], [0, 0, 1, 1], [], []>} : vector<8x32xf32>, vector<32x64xf32>, vector<8x64xf32> -> vector<8x64xf32>
    %286 = vector.broadcast %201 : vector<1x64xf32> to vector<8x64xf32>
    %287 = arith.addf %285, %286 : vector<8x64xf32>
    %288 = vector.extract_strided_slice %287 {offsets = [0, 0], sizes = [8, 48], strides = [1, 1]} : vector<8x64xf32> to vector<8x48xf32>
    %289 = arith.negf %288 : vector<8x48xf32>
    %290 = math.exp %289 : vector<8x48xf32>
    %cst_63 = arith.constant 1.000000e+00 : f32
    %291 = vector.broadcast %cst_63 : f32 to vector<8x48xf32>
    %292 = arith.addf %291, %290 : vector<8x48xf32>
    %293 = arith.divf %291, %292 : vector<8x48xf32>
    %294 = vector.extract_strided_slice %287 {offsets = [0, 48], sizes = [8, 16], strides = [1, 1]} : vector<8x64xf32> to vector<8x16xf32>
    %295 = math.tanh %294 : vector<8x16xf32>
    %296 = vector.extract_strided_slice %293 {offsets = [0, 0], sizes = [8, 16], strides = [1, 1]} : vector<8x48xf32> to vector<8x16xf32>
    %297 = vector.extract_strided_slice %293 {offsets = [0, 16], sizes = [8, 16], strides = [1, 1]} : vector<8x48xf32> to vector<8x16xf32>
    %298 = vector.extract_strided_slice %293 {offsets = [0, 32], sizes = [8, 16], strides = [1, 1]} : vector<8x48xf32> to vector<8x16xf32>
    %299 = arith.mulf %297, %281 : vector<8x16xf32>
    %300 = arith.mulf %296, %295 : vector<8x16xf32>
    %301 = arith.addf %299, %300 : vector<8x16xf32>
    %302 = math.tanh %301 : vector<8x16xf32>
    %303 = arith.mulf %298, %302 : vector<8x16xf32>
    %304 = tpu.concatenate %161, %303 in 1 : vector<8x16xf32>, vector<8x16xf32> -> vector<8x32xf32>
    %cst_64 = arith.constant dense<0.000000e+00> : vector<8x64xf32>
    %305 = tpu.matmul %304, %200, %cst_64 {dimension_numbers = #tpu.dot_dimension_numbers<[1], [0], [0], [1], [0, 0, 1, 1], [], []>} : vector<8x32xf32>, vector<32x64xf32>, vector<8x64xf32> -> vector<8x64xf32>
    %306 = vector.broadcast %201 : vector<1x64xf32> to vector<8x64xf32>
    %307 = arith.addf %305, %306 : vector<8x64xf32>
    %308 = vector.extract_strided_slice %307 {offsets = [0, 0], sizes = [8, 48], strides = [1, 1]} : vector<8x64xf32> to vector<8x48xf32>
    %309 = arith.negf %308 : vector<8x48xf32>
    %310 = math.exp %309 : vector<8x48xf32>
    %cst_65 = arith.constant 1.000000e+00 : f32
    %311 = vector.broadcast %cst_65 : f32 to vector<8x48xf32>
    %312 = arith.addf %311, %310 : vector<8x48xf32>
    %313 = arith.divf %311, %312 : vector<8x48xf32>
    %314 = vector.extract_strided_slice %307 {offsets = [0, 48], sizes = [8, 16], strides = [1, 1]} : vector<8x64xf32> to vector<8x16xf32>
    %315 = math.tanh %314 : vector<8x16xf32>
    %316 = vector.extract_strided_slice %313 {offsets = [0, 0], sizes = [8, 16], strides = [1, 1]} : vector<8x48xf32> to vector<8x16xf32>
    %317 = vector.extract_strided_slice %313 {offsets = [0, 16], sizes = [8, 16], strides = [1, 1]} : vector<8x48xf32> to vector<8x16xf32>
    %318 = vector.extract_strided_slice %313 {offsets = [0, 32], sizes = [8, 16], strides = [1, 1]} : vector<8x48xf32> to vector<8x16xf32>
    %319 = arith.mulf %317, %301 : vector<8x16xf32>
    %320 = arith.mulf %316, %315 : vector<8x16xf32>
    %321 = arith.addf %319, %320 : vector<8x16xf32>
    %322 = math.tanh %321 : vector<8x16xf32>
    %323 = arith.mulf %318, %322 : vector<8x16xf32>
    %324 = tpu.concatenate %180, %323 in 1 : vector<8x16xf32>, vector<8x16xf32> -> vector<8x32xf32>
    %cst_66 = arith.constant dense<0.000000e+00> : vector<8x64xf32>
    %325 = tpu.matmul %324, %200, %cst_66 {dimension_numbers = #tpu.dot_dimension_numbers<[1], [0], [0], [1], [0, 0, 1, 1], [], []>} : vector<8x32xf32>, vector<32x64xf32>, vector<8x64xf32> -> vector<8x64xf32>
    %326 = vector.broadcast %201 : vector<1x64xf32> to vector<8x64xf32>
    %327 = arith.addf %325, %326 : vector<8x64xf32>
    %328 = vector.extract_strided_slice %327 {offsets = [0, 0], sizes = [8, 48], strides = [1, 1]} : vector<8x64xf32> to vector<8x48xf32>
    %329 = arith.negf %328 : vector<8x48xf32>
    %330 = math.exp %329 : vector<8x48xf32>
    %cst_67 = arith.constant 1.000000e+00 : f32
    %331 = vector.broadcast %cst_67 : f32 to vector<8x48xf32>
    %332 = arith.addf %331, %330 : vector<8x48xf32>
    %333 = arith.divf %331, %332 : vector<8x48xf32>
    %334 = vector.extract_strided_slice %327 {offsets = [0, 48], sizes = [8, 16], strides = [1, 1]} : vector<8x64xf32> to vector<8x16xf32>
    %335 = math.tanh %334 : vector<8x16xf32>
    %336 = vector.extract_strided_slice %333 {offsets = [0, 0], sizes = [8, 16], strides = [1, 1]} : vector<8x48xf32> to vector<8x16xf32>
    %337 = vector.extract_strided_slice %333 {offsets = [0, 16], sizes = [8, 16], strides = [1, 1]} : vector<8x48xf32> to vector<8x16xf32>
    %338 = vector.extract_strided_slice %333 {offsets = [0, 32], sizes = [8, 16], strides = [1, 1]} : vector<8x48xf32> to vector<8x16xf32>
    %339 = arith.mulf %337, %321 : vector<8x16xf32>
    %340 = arith.mulf %336, %335 : vector<8x16xf32>
    %341 = arith.addf %339, %340 : vector<8x16xf32>
    %342 = math.tanh %341 : vector<8x16xf32>
    %343 = arith.mulf %338, %342 : vector<8x16xf32>
    %344 = tpu.concatenate %199, %343 in 1 : vector<8x16xf32>, vector<8x16xf32> -> vector<8x32xf32>
    %cst_68 = arith.constant dense<0.000000e+00> : vector<8x64xf32>
    %345 = tpu.matmul %344, %200, %cst_68 {dimension_numbers = #tpu.dot_dimension_numbers<[1], [0], [0], [1], [0, 0, 1, 1], [], []>} : vector<8x32xf32>, vector<32x64xf32>, vector<8x64xf32> -> vector<8x64xf32>
    %346 = vector.broadcast %201 : vector<1x64xf32> to vector<8x64xf32>
    %347 = arith.addf %345, %346 : vector<8x64xf32>
    %348 = vector.extract_strided_slice %347 {offsets = [0, 0], sizes = [8, 48], strides = [1, 1]} : vector<8x64xf32> to vector<8x48xf32>
    %349 = arith.negf %348 : vector<8x48xf32>
    %350 = math.exp %349 : vector<8x48xf32>
    %cst_69 = arith.constant 1.000000e+00 : f32
    %351 = vector.broadcast %cst_69 : f32 to vector<8x48xf32>
    %352 = arith.addf %351, %350 : vector<8x48xf32>
    %353 = arith.divf %351, %352 : vector<8x48xf32>
    %354 = vector.extract_strided_slice %347 {offsets = [0, 48], sizes = [8, 16], strides = [1, 1]} : vector<8x64xf32> to vector<8x16xf32>
    %355 = math.tanh %354 : vector<8x16xf32>
    %356 = vector.extract_strided_slice %353 {offsets = [0, 0], sizes = [8, 16], strides = [1, 1]} : vector<8x48xf32> to vector<8x16xf32>
    %357 = vector.extract_strided_slice %353 {offsets = [0, 16], sizes = [8, 16], strides = [1, 1]} : vector<8x48xf32> to vector<8x16xf32>
    %358 = vector.extract_strided_slice %353 {offsets = [0, 32], sizes = [8, 16], strides = [1, 1]} : vector<8x48xf32> to vector<8x16xf32>
    %359 = arith.mulf %357, %341 : vector<8x16xf32>
    %360 = arith.mulf %356, %355 : vector<8x16xf32>
    %361 = arith.addf %359, %360 : vector<8x16xf32>
    %362 = math.tanh %361 : vector<8x16xf32>
    %363 = arith.mulf %358, %362 : vector<8x16xf32>
    %cst_70 = arith.constant 0.000000e+00 : f32
    %364 = vector.broadcast %cst_70 : f32 to vector<8x24xf32>
    %365 = arith.maximumf %36, %364 : vector<8x24xf32>
    %cst_71 = arith.constant 0.000000e+00 : f32
    %366 = vector.broadcast %cst_71 : f32 to vector<8x16xf32>
    %367 = arith.maximumf %363, %366 : vector<8x16xf32>
    %c0_72 = arith.constant 0 : index
    %c0_73 = arith.constant 0 : index
    %368 = vector.load %arg8[%c0_72, %c0_73] : memref<24x4xf32, #tpu.memory_space<vmem>>, vector<24x4xf32>
    %cst_74 = arith.constant dense<0.000000e+00> : vector<8x4xf32>
    %369 = tpu.matmul %365, %368, %cst_74 {dimension_numbers = #tpu.dot_dimension_numbers<[1], [0], [0], [1], [0, 0, 1, 1], [], []>} : vector<8x24xf32>, vector<24x4xf32>, vector<8x4xf32> -> vector<8x4xf32>
    %c0_75 = arith.constant 0 : index
    %c0_76 = arith.constant 0 : index
    %370 = vector.load %arg9[%c0_75, %c0_76] : memref<16x4xf32, #tpu.memory_space<vmem>>, vector<16x4xf32>
    %cst_77 = arith.constant dense<0.000000e+00> : vector<8x4xf32>
    %371 = tpu.matmul %367, %370, %cst_77 {dimension_numbers = #tpu.dot_dimension_numbers<[1], [0], [0], [1], [0, 0, 1, 1], [], []>} : vector<8x16xf32>, vector<16x4xf32>, vector<8x4xf32> -> vector<8x4xf32>
    %372 = arith.addf %369, %371 : vector<8x4xf32>
    %c0_78 = arith.constant 0 : index
    %c0_79 = arith.constant 0 : index
    %373 = vector.load %arg10[%c0_78, %c0_79] : memref<1x4xf32, #tpu.memory_space<vmem>>, vector<1x4xf32>
    %374 = vector.broadcast %373 : vector<1x4xf32> to vector<8x4xf32>
    %375 = arith.addf %372, %374 : vector<8x4xf32>
    %cst_80 = arith.constant dense<0xFF800000> : vector<8xf32>
    %376 = vector.multi_reduction <maximumf>, %375, %cst_80 [1] : vector<8x4xf32> to vector<8xf32>
    %377 = vector.shape_cast %376 : vector<8xf32> to vector<8x1xf32>
    %378 = vector.broadcast %377 : vector<8x1xf32> to vector<8x4xf32>
    %379 = arith.subf %375, %378 : vector<8x4xf32>
    %380 = math.exp %379 : vector<8x4xf32>
    %cst_81 = arith.constant dense<0.000000e+00> : vector<8xf32>
    %381 = vector.multi_reduction <add>, %380, %cst_81 [1] : vector<8x4xf32> to vector<8xf32>
    %382 = vector.shape_cast %381 : vector<8xf32> to vector<8x1xf32>
    %383 = tpu.reciprocal %382 {approx = true} : vector<8x1xf32> -> vector<8x1xf32>
    %384 = vector.broadcast %383 : vector<8x1xf32> to vector<8x4xf32>
    %385 = arith.mulf %380, %384 : vector<8x4xf32>
    %c0_82 = arith.constant 0 : index
    %c0_83 = arith.constant 0 : index
    %386 = vector.load %arg16[%c0_82, %c0_83] : memref<8x4xf32, #tpu.memory_space<vmem>>, vector<8x4xf32>
    tpu.vector_store %arg16[%c0_82, %c0_83], %385 {strides = array<i32>} : memref<8x4xf32, #tpu.memory_space<vmem>>, vector<8x4xf32>,
    return
  }
}

</mosaic_0001>

<bundles_post_ra>
// kernel: neural_net_forward.2
= control target key start
LH: loop header
LB: loop body
LE: loop exit
PB: predicated region body
PF: predicated region fallthrough
CT: control target
= control target key end

     0   :  { %v2841_v3 = vmov 0.0|0.0   ;;  %vm2842_vm0 = vmmov 0   ;;  %v2843_v5 = vmov 0.0   ;;  %vm92_vm1 = vcmask 130048   ;;  %s2845_s18 = smov 80   ;;  %s2847_s19 = smov 96   ;;  %s3311_s0 = inlined_call_operand.vmem [shape: f32[8,16], index: 0, kind: input, shape index: {}]   ;;  %s3312_s1 = inlined_call_operand.vmem [shape: f32[1,16], index: 1, kind: input, shape index: {}]   ;;  %s3313_s2 = inlined_call_operand.vmem [shape: f32[1,16], index: 2, kind: input, shape index: {}]   ;;  %s3314_s3 = inlined_call_operand.vmem [shape: f32[16,32], index: 3, kind: input, shape index: {}]   ;;  %s3315_s4 = inlined_call_operand.vmem [shape: f32[1,32], index: 4, kind: input, shape index: {}]   ;;  %s3316_s5 = inlined_call_operand.vmem [shape: f32[32,24], index: 5, kind: input, shape index: {}]   ;;  %s3317_s6 = inlined_call_operand.vmem [shape: f32[1,24], index: 6, kind: input, shape index: {}]   ;;  %s3318_s7 = inlined_call_operand.vmem [shape: f32[24,4], index: 7, kind: input, shape index: {}]   ;;  %s3319_s8 = inlined_call_operand.vmem [shape: f32[16,4], index: 8, kind: input, shape index: {}]   ;;  %s3320_s9 = inlined_call_operand.vmem [shape: f32[1,4], index: 9, kind: input, shape index: {}]   ;;  %s3321_s10 = inlined_call_operand.vmem [shape: f32[10,64], index: 10, kind: input, shape index: {}]   ;;  %s3322_s11 = inlined_call_operand.vmem [shape: f32[16,64], index: 11, kind: input, shape index: {}]   ;;  %s3323_s12 = inlined_call_operand.vmem [shape: f32[1,64], index: 12, kind: input, shape index: {}]   ;;  %s3324_s13 = inlined_call_operand.vmem [shape: f32[32,64], index: 13, kind: input, shape index: {}]   ;;  %s3325_s14 = inlined_call_operand.vmem [shape: f32[1,64], index: 14, kind: input, shape index: {}]   ;;  %s3326_s15 = inlined_call_operand.vmem [shape: f32[8,8,10], index: 15, kind: input, shape index: {}]   ;;  %s3327_s16 = inlined_call_operand.vmem [shape: f32[8,4], index: 16, kind: output, shape index: {}]  }
   0x1   :  { %3328 = sst [smem:[#allocation3_spill]] %s3311_s0  ;;  %v131_v0 = vld [vmem:[%s3314_s3] sm:$0xff]  ;;  %v132_v1 = vld [vmem:[%s3314_s3 + $0x8] sm:$0xff]  ;;  %2606 = vmatprep.subr.bf16.mxu1 %v2841_v3  ;;  %2416 = vmatprep.mubr.msk.f32.mxu1 %vm2842_vm0, %v2843_v5  ;;  %v216_v36 = vld [vmem:[%s3316_s5 + $0x10] sm:$0xff]  ;;  %vm349_vm2 = vcmask 1041408   ;;  %vm2844_vm3 = vmmov 1  }
   0x2   :  { %s3329_s27 = sld [smem:[#allocation3_spill]]  ;;  %v2607_v4 = vpack.c.bf16 %v132_v1, %v131_v0  ;;  %v2272_v26 = vld [vmem:[%s3312_s1] ss:$0 sm:$0xff]  ;;  %v215_v29 = vld [vmem:[%s3316_s5 + $0x8] sm:$0xff]  ;;  %v217_v37 = vld [vmem:[%s3316_s5 + $0x18] sm:$0xff]  ;;  %vm324_vm5 = vcmask 80896  }
   0x3   :  { %v214_v28 = vld [vmem:[%s3316_s5] sm:$0xff]  ;;  %v316_v35 = vld [vmem:[%s3321_s10 + $0x8] sm:$0x3]  ;;  %v2613_v39 = vpack.c.bf16 %v217_v37, %v216_v36  ;;  %vm2616_vm4 = vmpackc.low %vm349_vm2, %vm2844_vm3  ;;  %vm225_vm6 = vcmask 261120   ;;  %vm2166_vm7 = vcmask 195584   ;;  %vm2248_vm8 = vcmask 31744  }
   0x4   :  { %2608 = vmatpush3.bf16.msra.mxu1 %v2607_v4  ;;  %v2273_v30 = vld [vmem:[%s3313_s2] ss:$0 sm:$0xff]  ;;  %v2610_v32 = vpack.c.bf16 %v215_v29, %v214_v28  ;;  %v2265_v42 = vld [vmem:[%s3326_s15 + $0x8] sm:$0xff]  ;;  %v2267_v28 = vld [vmem:[%s3326_s15 + $0x18] sm:$0xff] }
   0x5   :  { %2609 = vmatprep.subr.bf16.mxu1 %v2841_v3  ;;  %v315_v34 = vld [vmem:[%s3321_s10] sm:$0xff]  ;;  %v308_v43 = vmax.f32 %v2265_v42, 0.0  ;;  %v459_v45 = vld [vmem:[%s3322_s11 + $0x8] sm:$0xff] }
   0x6   :  { %v2615_v38 = vpack.c.bf16 %v316_v35, %v315_v34  ;;  %v53_v40 = vld [vmem:[%s3326_s15] sm:$0xff] }
   0x7   :  { %v307_v41 = vmax.f32 %v53_v40, 0.0  ;;  %v458_v44 = vld [vmem:[%s3322_s11] sm:$0xff] }
   0x8   :  { %v91_v2 = vld [vmem:[%s3329_s27] sm:$0xff]  ;;  %2617 = vmatprep.subr.msk.bf16.mxu0 %vm2616_vm4, %v2615_v38  ;;  %v2992_v46 = vpack.c.bf16 %v459_v45, %v458_v44 }
   0x9   :  { %v93_v6 = vsel %vm92_vm1, %v91_v2, 0.0  ;;  %2620 = vmatpush3.bf16.msk.msra.mxu0 %vm2616_vm4, %v2615_v38  ;;  %2434 = vmatprep.mubr.msk.f32.mxu0 %vm324_vm5, %v307_v41  ;;  %v2274_v47 = vld [vmem:[%s3315_s4] ss:$0 sm:$0xff] }
   0xa   :  { %v94_v7 = vrot.slane %v93_v6, 4  ;;  %2630 = vmatprep.subr.bf16.mxu0 %v2841_v3  ;;  %v3013_v54 = vld [vmem:[%s3323_s12] ss:$0 sm:$0xff]  ;;  %s2846_s12 = smov 16  }
   0xc   :  { %v95_v8 = vadd.f32 %v94_v7, %v93_v6  ;;  %2435 = vmatmul.mubr.msk.f32.vlgmr.msra.gmra.mrb[0].mxu0 %vm324_vm5, %v308_v43 }
   0xd   :  { %2632 = vmatpush3.bf16.msra.mxu0 %v2992_v46 }
   0xe   :  { %v96_v9 = vrot.slane %v95_v8, 2  ;;  %2636 = vmatprep.subr.bf16.mxu0 %v2841_v3 }
  0x10   :  { %v97_v10 = vadd.f32 %v96_v9, %v95_v8 }
  0x12   :  { %v98_v11 = vrot.slane %v97_v10, 1 }
  0x14   :  { %v99_v12 = vadd.f32 %v98_v11, %v97_v10 }
  0x16   :  { %v101_v13 = vmul.f32 0.125, %v99_v12 }
  0x18   :  { %v102_v14 = vsub.f32 %v91_v2, %v101_v13 }
  0x1a   :  { %v103_v15 = vmul.f32 %v102_v14, %v102_v14 }
  0x1c   :  { %v104_v16 = vsel %vm92_vm1, %v103_v15, 0.0 }
  0x1d   :  { %v105_v17 = vrot.slane %v104_v16, 4 }
  0x1f   :  { %v106_v18 = vadd.f32 %v105_v17, %v104_v16 }
  0x21   :  { %v107_v19 = vrot.slane %v106_v18, 2 }
  0x23   :  { %v108_v20 = vadd.f32 %v107_v19, %v106_v18 }
  0x25   :  { %v109_v21 = vrot.slane %v108_v20, 1 }
  0x27   :  { %v110_v22 = vadd.f32 %v109_v21, %v108_v20 }
  0x29   :  { %v111_v23 = vmul.f32 0.125, %v110_v22 }
  0x2b   :  { %v112_v24 = vadd.f32 1e-05, %v111_v23 }
  0x2d   :  { %2707 = vrsqrt.f32 %v112_v24 }
  0x37   :  { %v2708_v25 = vpop.eup %2707 }
  0x38   :  { %v114_v27 = vmul.f32 %v2708_v25, %v102_v14 }
  0x3a   :  { %v122_v31 = vmul.f32 %v2272_v26, %v114_v27  ;;  %v2266_v27 = vld [vmem:[%s3326_s15 + $0x10] sm:$0xff] }
  0x3b   :  { %v309_v29 = vmax.f32 %v2266_v27, 0.0 }
  0x3c   :  { %v130_v33 = vadd.f32 %v2273_v30, %v122_v31  ;;  %v310_v30 = vmax.f32 %v2267_v28, 0.0 }
  0x3d   :  { %2437 = vmatprep.mubr.msk.f32.mxu0 %vm324_vm5, %v309_v29 }
  0x3e   :  { %2417 = vmatmul.mubr.msk.f32.vlgmr.msra.gmra.mrb[0].mxu1 %vm92_vm1, %v130_v33  ;;  %2438 = vmatmul.mubr.msk.f32.gmra.mrb[2].mxu0 %vm324_vm5, %v310_v30 }
  0x3f   :  { %2611 = vmatpush3.bf16.msra.mxu1 %v2610_v32  ;;  %2427 = vmatprep.mubr.msk.f32.mxu1 %vm2842_vm0, %v2843_v5 }
  0x40   :  { %2612 = vmatprep.subr.bf16.mxu1 %v2841_v3 }
  0x43   :  { %2614 = vmatpush3.bf16.msra.mxu1 %v2613_v39 }
  0x44   :  { %2621 = vmatprep.subr.bf16.mxu1 %v2841_v3 }
  0xdf   :  { %v2436_v52 = vpop.f32.mrb[0].mxu0 }
  0xe0   :  { %v419_v53 = vpop.f32.mrb[1].mxu0  ;;  %v425_v13 = vadd.f32 %v2436_v52, %v3013_v54  ;;  %v2268_v52 = vld [vmem:[%s3326_s15 + $0x20] sm:$0xff] }
  0xe1   :  { %v420_v57 = vadd.f32 %v3013_v54, %v419_v53  ;;  %v2269_v53 = vld [vmem:[%s3326_s15 + $0x28] sm:$0xff] }
 0x111   :  { %v209_v48 = vpop.f32.mrb[0].mxu1  ;;  %v2439_v34 = vpop.f32.mrb[2].mxu0 }
 0x112   :  { %v210_v49 = vadd.f32 %v2274_v47, %v209_v48  ;;  %v2418_v50 = vpop.f32.mrb[1].mxu1  ;;  %v429_v35 = vpop.f32.mrb[3].mxu0 }
 0x113   :  { %v430_v37 = vadd.f32 %v3013_v54, %v429_v35 }
 0x114   :  { %v213_v51 = vmax.f32 %v210_v49, 0.0 }
 0x116   :  { %2428 = vmatmul.mubr.msk.f32.vlgmr.msra.gmra.mrb[2].mxu1 %vm225_vm6, %v213_v51 }
 0x117   :  { %2623 = vmatpush3.bf16.msra.mxu1 %v2992_v46  ;;  %2450 = vmatprep.mubr.msk.f32.mxu1 %vm2842_vm0, %v2843_v5 }
 0x118   :  { %2624 = vmatprep.subr.bf16.mxu1 %v2841_v3 }
 0x11a   :  { %2451 = vmatmul.mubr.f32.vlgmr.msra.gmra.mrb[4].mxu1 %v2843_v5 }
 0x11b   :  { %2626 = vmatpush3.bf16.msra.mxu1 %v2992_v46  ;;  %2457 = vmatprep.mubr.msk.f32.mxu1 %vm2842_vm0, %v2843_v5 }
 0x11c   :  { %2627 = vmatprep.subr.bf16.mxu1 %v2841_v3 }
 0x1e9   :  { %v3015_v55 = vpop.f32.mrb[2].mxu1 }
 0x1ea   :  { %v2429_v56 = vpop.f32.mrb[3].mxu1 }
 0x1eb   :  { %v2270_v56 = vld [vmem:[%s3326_s15 + $0x30] sm:$0xff] }
 0x1ed   :  { %v529_v58 = vpop.f32.mrb[4].mxu1 }
 0x1ee   :  { %v530_v59 = vadd.f32 %v529_v58, %v420_v57  ;;  %v2452_v60 = vpop.f32.mrb[5].mxu1  ;;  %v311_v57 = vmax.f32 %v2268_v52, 0.0  ;;  %v312_v58 = vmax.f32 %v2269_v53, 0.0 }
 0x1ef   :  { %v2271_v60 = vld [vmem:[%s3326_s15 + $0x38] sm:$0xff] }
 0x1f0   :  { %2709 = vtanh.f32 %v530_v59  ;;  %v2288_v62 = vmul.f32 -1.442695, %v530_v59  ;;  %v313_v59 = vmax.f32 %v2270_v56, 0.0  ;;  %2440 = vmatprep.mubr.msk.f32.mxu0 %vm324_vm5, %v311_v57 }
 0x1f1   :  { %2441 = vmatmul.mubr.msk.f32.gmra.mrb[4].mxu0 %vm324_vm5, %v312_v58 }
 0x1f2   :  { %2711 = vpow2.f32 %v2288_v62  ;;  %2443 = vmatprep.mubr.msk.f32.mxu0 %vm324_vm5, %v313_v59 }
 0x1fa   :  { %v2710_v61 = vpop.eup %2709 }
 0x1fb   :  { %542 = vrot.lane.b32.xlu0 %v2710_v61, %s2845_s18  ;;  %v314_v61 = vmax.f32 %v2271_v60, 0.0 }
 0x1fc   :  { %v2712_v63 = vpop.eup %2711 }
 0x1fd   :  { %v536_v0 = vadd.f32 1.0, %v2712_v63  ;;  %2444 = vmatmul.mubr.msk.f32.gmra.mrb[6].mxu0 %vm324_vm5, %v314_v61 }
 0x1fe   :  { %2471 = vmatprep.mubr.msk.f32.mxu0 %vm2842_vm0, %v2843_v5 }
 0x1ff   :  { %2713 = vrcp.f32 %v536_v0 }
 0x209   :  { %v2714_v1 = vpop.eup %2713 }
 0x20a   :  { %v540_v6 = vmul.f32 0.0, %v2714_v1 }
 0x26d   :  { %v543_v2 = vpop.permute.xlu0 %542 }
 0x26e   :  { %v545_v4 = vmul.f32 %v2714_v1, %v543_v2 }
 0x270   :  { %547 = vrot.lane.b32.xlu0 %v545_v4, %s2846_s12 }
 0x2e2   :  { %v548_v7 = vpop.permute.xlu0 %547 }
 0x2e3   :  { %v550_v8 = vadd.f32 %v548_v7, %v540_v6 }
 0x2e5   :  { %2715 = vtanh.f32 %v550_v8 }
 0x2ef   :  { %v2716_v9 = vpop.eup %2715 }
 0x2f0   :  { %553 = vrot.lane.b32.xlu1 %v2716_v9, %s2846_s12 }
 0x362   :  { %v554_v10 = vpop.permute.xlu1 %553 }
 0x363   :  { %v556_v11 = vmul.f32 %v2714_v1, %v554_v10  ;;  %v3074_v1 = vpop.f32.mrb[4].mxu0 }
 0x364   :  { %v439_v2 = vpop.f32.mrb[5].mxu0 }
 0x365   :  { %558 = vrot.lane.b32.xlu1 %v556_v11, %s2847_s19  ;;  %v3076_v4 = vpop.f32.mrb[6].mxu0  ;;  %v440_v27 = vadd.f32 %v3013_v54, %v439_v2  ;;  %v1251_v2 = vld [vmem:[%s3324_s13 + $0x8] sm:$0xff] }
 0x366   :  { %v3078_v6 = vpop.f32.mrb[7].mxu0 }
 0x3d7   :  { %v3022_v12 = vpop.permute.xlu1 %558 }
 0x3d8   :  { %2458 = vmatmul.mubr.msk.f32.vlgmr.msra.gmra.mrb[6].mxu1 %vm92_vm1, %v3022_v12 }
 0x3d9   :  { %2629 = vmatpush3.bf16.msra.mxu1 %v2992_v46  ;;  %2464 = vmatprep.mubr.msk.f32.mxu1 %vm2842_vm0, %v2843_v5 }
 0x3da   :  { %2633 = vmatprep.subr.bf16.mxu1 %v2841_v3 }
 0x4ab   :  { %v628_v14 = vpop.f32.mrb[6].mxu1 }
 0x4ac   :  { %v629_v15 = vadd.f32 %v628_v14, %v425_v13  ;;  %v2459_v16 = vpop.f32.mrb[7].mxu1 }
 0x4ae   :  { %2717 = vtanh.f32 %v629_v15  ;;  %v2290_v18 = vmul.f32 -1.442695, %v629_v15 }
 0x4b0   :  { %2719 = vpow2.f32 %v2290_v18 }
 0x4b8   :  { %v2718_v17 = vpop.eup %2717 }
 0x4b9   :  { %641 = vrot.lane.b32.xlu0 %v2718_v17, %s2845_s18 }
 0x4ba   :  { %v2720_v19 = vpop.eup %2719 }
 0x4bb   :  { %v635_v20 = vadd.f32 1.0, %v2720_v19 }
 0x4bd   :  { %2721 = vrcp.f32 %v635_v20 }
 0x4c7   :  { %v2722_v21 = vpop.eup %2721 }
 0x4c8   :  { %v639_v24 = vmul.f32 %v2722_v21, %v550_v8  ;;  %v435_v8 = vadd.f32 %v2439_v34, %v3013_v54 }
 0x52b   :  { %v642_v22 = vpop.permute.xlu0 %641 }
 0x52c   :  { %v644_v23 = vmul.f32 %v2722_v21, %v642_v22 }
 0x52e   :  { %646 = vrot.lane.b32.xlu1 %v644_v23, %s2846_s12 }
 0x5a0   :  { %v647_v25 = vpop.permute.xlu1 %646 }
 0x5a1   :  { %v649_v26 = vadd.f32 %v647_v25, %v639_v24 }
 0x5a3   :  { %2723 = vtanh.f32 %v649_v26 }
 0x5ad   :  { %v2724_v31 = vpop.eup %2723 }
 0x5ae   :  { %652 = vrot.lane.b32.xlu0 %v2724_v31, %s2846_s12 }
 0x620   :  { %v653_v32 = vpop.permute.xlu0 %652 }
 0x621   :  { %v655_v33 = vmul.f32 %v2722_v21, %v653_v32 }
 0x623   :  { %657 = vrot.lane.b32.xlu1 %v655_v33, %s2847_s19 }
 0x695   :  { %v3043_v36 = vpop.permute.xlu1 %657 }
 0x696   :  { %2465 = vmatmul.mubr.msk.f32.vlgmr.msra.gmra.mrb[8].mxu1 %vm92_vm1, %v3043_v36 }
 0x697   :  { %2635 = vmatpush3.bf16.msra.mxu1 %v2992_v46  ;;  %2478 = vmatprep.mubr.msk.f32.mxu1 %vm2842_vm0, %v2843_v5 }
 0x698   :  { %2639 = vmatprep.subr.bf16.mxu1 %v2841_v3 }
 0x769   :  { %v727_v38 = vpop.f32.mrb[8].mxu1 }
 0x76a   :  { %v728_v39 = vadd.f32 %v727_v38, %v430_v37  ;;  %v2466_v40 = vpop.f32.mrb[9].mxu1 }
 0x76c   :  { %2725 = vtanh.f32 %v728_v39  ;;  %v2292_v42 = vmul.f32 -1.442695, %v728_v39 }
 0x76e   :  { %2727 = vpow2.f32 %v2292_v42 }
 0x776   :  { %v2726_v41 = vpop.eup %2725 }
 0x777   :  { %740 = vrot.lane.b32.xlu0 %v2726_v41, %s2845_s18 }
 0x778   :  { %v2728_v43 = vpop.eup %2727 }
 0x779   :  { %v734_v44 = vadd.f32 1.0, %v2728_v43 }
 0x77b   :  { %2729 = vrcp.f32 %v734_v44 }
 0x785   :  { %v2730_v45 = vpop.eup %2729 }
 0x786   :  { %v738_v49 = vmul.f32 %v2730_v45, %v649_v26 }
 0x7e9   :  { %v741_v47 = vpop.permute.xlu0 %740 }
 0x7ea   :  { %v743_v48 = vmul.f32 %v2730_v45, %v741_v47  ;;  %v445_v47 = vadd.f32 %v3074_v1, %v3013_v54  ;;  %v1250_v1 = vld [vmem:[%s3324_s13] sm:$0xff] }
 0x7ec   :  { %745 = vrot.lane.b32.xlu1 %v743_v48, %s2846_s12 }
 0x85e   :  { %v746_v50 = vpop.permute.xlu1 %745 }
 0x85f   :  { %v748_v51 = vadd.f32 %v746_v50, %v738_v49 }
 0x861   :  { %2731 = vtanh.f32 %v748_v51 }
 0x86b   :  { %v2732_v62 = vpop.eup %2731 }
 0x86c   :  { %751 = vrot.lane.b32.xlu0 %v2732_v62, %s2846_s12 }
 0x8de   :  { %v752_v63 = vpop.permute.xlu0 %751 }
 0x8df   :  { %v754_v0 = vmul.f32 %v2730_v45, %v752_v63 }
 0x8e1   :  { %756 = vrot.lane.b32.xlu1 %v754_v0, %s2847_s19 }
 0x953   :  { %v3080_v7 = vpop.permute.xlu1 %756 }
 0x954   :  { %2472 = vmatmul.mubr.msk.f32.vlgmr.msra.gmra.mrb[8].mxu0 %vm92_vm1, %v3080_v7 }
 0x955   :  { %2638 = vmatpush3.bf16.msra.mxu0 %v2992_v46  ;;  %2485 = vmatprep.mubr.msk.f32.mxu0 %vm2842_vm0, %v2843_v5 }
 0x956   :  { %2642 = vmatprep.subr.bf16.mxu0 %v2841_v3 }
 0xa27   :  { %v826_v9 = vpop.f32.mrb[8].mxu0 }
 0xa28   :  { %v827_v10 = vadd.f32 %v826_v9, %v435_v8  ;;  %v2473_v11 = vpop.f32.mrb[9].mxu0  ;;  %v3126_v8 = vpack.c.bf16 %v1251_v2, %v1250_v1  ;;  %v1252_v9 = vld [vmem:[%s3324_s13 + $0x10] sm:$0xff] }
 0xa2a   :  { %2733 = vtanh.f32 %v827_v10  ;;  %v2294_v14 = vmul.f32 -1.442695, %v827_v10  ;;  %v1253_v10 = vld [vmem:[%s3324_s13 + $0x18] sm:$0xff] }
 0xa2c   :  { %2735 = vpow2.f32 %v2294_v14  ;;  %v1256_v14 = vsel %vm92_vm1, %v3022_v12, 0.0  ;;  %v3160_v12 = vld [vmem:[%s3325_s14] ss:$0 sm:$0xff]  ;;  %s2848_s14 = smov 112  }
 0xa34   :  { %v2734_v13 = vpop.eup %2733 }
 0xa35   :  { %839 = vrot.lane.b32.xlu0 %v2734_v13, %s2845_s18  ;;  %v3139_v13 = vpack.c.bf16 %v1253_v10, %v1252_v9 }
 0xa36   :  { %v2736_v15 = vpop.eup %2735 }
 0xa37   :  { %v833_v16 = vadd.f32 1.0, %v2736_v15  ;;  %v450_v15 = vadd.f32 %v3013_v54, %v3078_v6 }
 0xa39   :  { %2737 = vrcp.f32 %v833_v16 }
 0xa43   :  { %v2738_v17 = vpop.eup %2737 }
 0xa44   :  { %v837_v20 = vmul.f32 %v2738_v17, %v748_v51 }
 0xaa7   :  { %v840_v18 = vpop.permute.xlu0 %839 }
 0xaa8   :  { %v842_v19 = vmul.f32 %v2738_v17, %v840_v18 }
 0xaaa   :  { %844 = vrot.lane.b32.xlu1 %v842_v19, %s2846_s12 }
 0xb1c   :  { %v845_v21 = vpop.permute.xlu1 %844 }
 0xb1d   :  { %v847_v22 = vadd.f32 %v845_v21, %v837_v20 }
 0xb1f   :  { %2739 = vtanh.f32 %v847_v22 }
 0xb29   :  { %v2740_v23 = vpop.eup %2739 }
 0xb2a   :  { %850 = vrot.lane.b32.xlu0 %v2740_v23, %s2846_s12 }
 0xb9c   :  { %v851_v24 = vpop.permute.xlu0 %850 }
 0xb9d   :  { %v853_v25 = vmul.f32 %v2738_v17, %v851_v24 }
 0xb9f   :  { %855 = vrot.lane.b32.xlu1 %v853_v25, %s2847_s19 }
 0xc11   :  { %v3093_v26 = vpop.permute.xlu1 %855 }
 0xc12   :  { %2479 = vmatmul.mubr.msk.f32.vlgmr.msra.gmra.mrb[10].mxu1 %vm92_vm1, %v3093_v26 }
 0xc13   :  { %2641 = vmatpush3.bf16.msra.mxu1 %v2992_v46  ;;  %2492 = vmatprep.mubr.msk.f32.mxu1 %vm2842_vm0, %v2843_v5 }
 0xc14   :  { %2645 = vmatprep.subr.bf16.mxu1 %v2841_v3 }
 0xce5   :  { %v925_v28 = vpop.f32.mrb[10].mxu1 }
 0xce6   :  { %v926_v29 = vadd.f32 %v925_v28, %v440_v27  ;;  %v2480_v30 = vpop.f32.mrb[11].mxu1 }
 0xce8   :  { %2741 = vtanh.f32 %v926_v29  ;;  %v2296_v32 = vmul.f32 -1.442695, %v926_v29 }
 0xcea   :  { %2743 = vpow2.f32 %v2296_v32 }
 0xcf2   :  { %v2742_v31 = vpop.eup %2741 }
 0xcf3   :  { %938 = vrot.lane.b32.xlu0 %v2742_v31, %s2845_s18 }
 0xcf4   :  { %v2744_v33 = vpop.eup %2743 }
 0xcf5   :  { %v932_v34 = vadd.f32 1.0, %v2744_v33 }
 0xcf7   :  { %2745 = vrcp.f32 %v932_v34 }
 0xd01   :  { %v2746_v35 = vpop.eup %2745 }
 0xd02   :  { %v936_v39 = vmul.f32 %v2746_v35, %v847_v22 }
 0xd65   :  { %v939_v37 = vpop.permute.xlu0 %938 }
 0xd66   :  { %v941_v38 = vmul.f32 %v2746_v35, %v939_v37 }
 0xd68   :  { %943 = vrot.lane.b32.xlu1 %v941_v38, %s2846_s12 }
 0xdda   :  { %v944_v40 = vpop.permute.xlu1 %943 }
 0xddb   :  { %v946_v41 = vadd.f32 %v944_v40, %v936_v39 }
 0xddd   :  { %2747 = vtanh.f32 %v946_v41 }
 0xde7   :  { %v2748_v42 = vpop.eup %2747 }
 0xde8   :  { %949 = vrot.lane.b32.xlu0 %v2748_v42, %s2846_s12 }
 0xe5a   :  { %v950_v43 = vpop.permute.xlu0 %949 }
 0xe5b   :  { %v952_v44 = vmul.f32 %v2746_v35, %v950_v43 }
 0xe5d   :  { %954 = vrot.lane.b32.xlu1 %v952_v44, %s2847_s19 }
 0xecf   :  { %v3106_v45 = vpop.permute.xlu1 %954 }
 0xed0   :  { %2486 = vmatmul.mubr.msk.f32.vlgmr.msra.gmra.mrb[10].mxu0 %vm92_vm1, %v3106_v45 }
 0xed1   :  { %2644 = vmatpush3.bf16.msra.mxu0 %v2992_v46  ;;  %2499 = vmatprep.mubr.msk.f32.mxu0 %vm2842_vm0, %v2843_v5 }
 0xed2   :  { %2651 = vmatprep.subr.bf16.mxu0 %v2841_v3 }
 0xfa3   :  { %v1024_v48 = vpop.f32.mrb[10].mxu0 }
 0xfa4   :  { %v1025_v49 = vadd.f32 %v1024_v48, %v445_v47  ;;  %v2487_v50 = vpop.f32.mrb[11].mxu0 }
 0xfa6   :  { %2749 = vtanh.f32 %v1025_v49  ;;  %v2298_v52 = vmul.f32 -1.442695, %v1025_v49 }
 0xfa8   :  { %2751 = vpow2.f32 %v2298_v52 }
 0xfb0   :  { %v2750_v51 = vpop.eup %2749 }
 0xfb1   :  { %1037 = vrot.lane.b32.xlu0 %v2750_v51, %s2845_s18 }
 0xfb2   :  { %v2752_v53 = vpop.eup %2751 }
 0xfb3   :  { %v1031_v56 = vadd.f32 1.0, %v2752_v53 }
 0xfb5   :  { %2753 = vrcp.f32 %v1031_v56  ;;  %v455_v56 = vadd.f32 %v3076_v4, %v3013_v54 }
 0xfbf   :  { %v2754_v46 = vpop.eup %2753 }
 0xfc0   :  { %v1035_v59 = vmul.f32 %v2754_v46, %v946_v41 }
0x1023   :  { %v1038_v57 = vpop.permute.xlu0 %1037 }
0x1024   :  { %v1040_v58 = vmul.f32 %v2754_v46, %v1038_v57 }
0x1026   :  { %1042 = vrot.lane.b32.xlu1 %v1040_v58, %s2846_s12 }
0x1098   :  { %v1043_v60 = vpop.permute.xlu1 %1042 }
0x1099   :  { %v1045_v61 = vadd.f32 %v1043_v60, %v1035_v59 }
0x109b   :  { %2755 = vtanh.f32 %v1045_v61 }
0x10a5   :  { %v2756_v62 = vpop.eup %2755 }
0x10a6   :  { %1048 = vrot.lane.b32.xlu0 %v2756_v62, %s2846_s12 }
0x1118   :  { %v1049_v63 = vpop.permute.xlu0 %1048 }
0x1119   :  { %v1051_v0 = vmul.f32 %v2754_v46, %v1049_v63 }
0x111b   :  { %1053 = vrot.lane.b32.xlu1 %v1051_v0, %s2847_s19 }
0x118d   :  { %v3134_v11 = vpop.permute.xlu1 %1053 }
0x118e   :  { %2493 = vmatmul.mubr.msk.f32.vlgmr.msra.gmra.mrb[12].mxu1 %vm92_vm1, %v3134_v11 }
0x118f   :  { %2647 = vmatpush3.bf16.msra.mxu1 %v3126_v8  ;;  %2510 = vmatprep.mubr.msk.f32.mxu1 %vm2842_vm0, %v2843_v5 }
0x1190   :  { %2648 = vmatprep.subr.bf16.mxu1 %v2841_v3 }
0x1193   :  { %2650 = vmatpush3.bf16.msra.mxu1 %v3139_v13 }
0x1194   :  { %2657 = vmatprep.subr.bf16.mxu1 %v2841_v3 }
0x1196   :  { %2511 = vmatmul.mubr.msk.f32.vlgmr.msra.gmra.mrb[14].mxu1 %vm225_vm6, %v1256_v14 }
0x1197   :  { %2659 = vmatpush3.bf16.msra.mxu1 %v3126_v8  ;;  %2532 = vmatprep.mubr.msk.f32.mxu1 %vm2842_vm0, %v2843_v5 }
0x1198   :  { %2660 = vmatprep.subr.bf16.mxu1 %v2841_v3 }
0x119b   :  { %2662 = vmatpush3.bf16.msra.mxu1 %v3139_v13 }
0x119c   :  { %2669 = vmatprep.subr.bf16.mxu1 %v2841_v3 }
0x1261   :  { %v1123_v16 = vpop.f32.mrb[12].mxu1 }
0x1262   :  { %v1124_v17 = vadd.f32 %v1123_v16, %v450_v15  ;;  %v2494_v18 = vpop.f32.mrb[13].mxu1 }
0x1264   :  { %2757 = vtanh.f32 %v1124_v17  ;;  %v2300_v6 = vmul.f32 -1.442695, %v1124_v17 }
0x1269   :  { %v1332_v19 = vpop.f32.mrb[14].mxu1 }
0x126a   :  { %v1333_v20 = vadd.f32 %v3160_v12, %v1332_v19  ;;  %v2512_v21 = vpop.f32.mrb[15].mxu1 }
0x126c   :  { %2759 = vtanh.f32 %v1333_v20  ;;  %v2305_v24 = vmul.f32 -1.442695, %v1333_v20 }
0x126d   :  { %2761 = vpow2.f32 %v2300_v6 }
0x126e   :  { %v2758_v22 = vpop.eup %2757  ;;  %2763 = vpow2.f32 %v2305_v24 }
0x126f   :  { %1136 = vrot.lane.b32.xlu0 %v2758_v22, %s2845_s18 }
0x1276   :  { %v2760_v23 = vpop.eup %2759 }
0x1277   :  { %1345 = vrot.lane.b32.xlu1 %v2760_v23, %s2845_s18  ;;  %v2762_v25 = vpop.eup %2761 }
0x1278   :  { %v1130_v27 = vadd.f32 1.0, %v2762_v25  ;;  %v2764_v28 = vpop.eup %2763 }
0x1279   :  { %v1339_v29 = vadd.f32 1.0, %v2764_v28 }
0x127a   :  { %2765 = vrcp.f32 %v1130_v27 }
0x127b   :  { %2767 = vrcp.f32 %v1339_v29 }
0x1284   :  { %v2766_v30 = vpop.eup %2765 }
0x1285   :  { %v2768_v33 = vpop.eup %2767  ;;  %v1134_v37 = vmul.f32 %v2766_v30, %v1045_v61 }
0x1286   :  { %v1343_v40 = vmul.f32 0.0, %v2768_v33 }
0x12e1   :  { %v1137_v31 = vpop.permute.xlu0 %1136 }
0x12e2   :  { %v1139_v32 = vmul.f32 %v2766_v30, %v1137_v31 }
0x12e4   :  { %1141 = vrot.lane.b32.xlu0 %v1139_v32, %s2846_s12 }
0x12e9   :  { %v1346_v34 = vpop.permute.xlu1 %1345 }
0x12ea   :  { %v1348_v35 = vmul.f32 %v2768_v33, %v1346_v34 }
0x12ec   :  { %1350 = vrot.lane.b32.xlu1 %v1348_v35, %s2846_s12 }
0x1356   :  { %v1142_v38 = vpop.permute.xlu0 %1141 }
0x1357   :  { %v3167_v39 = vadd.f32 %v1142_v38, %v1134_v37 }
0x1359   :  { %2769 = vtanh.f32 %v3167_v39 }
0x135e   :  { %v1351_v41 = vpop.permute.xlu1 %1350 }
0x135f   :  { %v1353_v42 = vadd.f32 %v1351_v41, %v1343_v40 }
0x1361   :  { %2771 = vtanh.f32 %v1353_v42 }
0x1363   :  { %v2770_v43 = vpop.eup %2769 }
0x1364   :  { %1147 = vrot.lane.b32.xlu0 %v2770_v43, %s2846_s12 }
0x136b   :  { %v2772_v44 = vpop.eup %2771 }
0x136c   :  { %1356 = vrot.lane.b32.xlu1 %v2772_v44, %s2846_s12 }
0x13d6   :  { %v1148_v47 = vpop.permute.xlu0 %1147 }
0x13d7   :  { %v1150_v48 = vmul.f32 %v2766_v30, %v1148_v47 }
0x13d9   :  { %1152 = vrot.lane.b32.xlu0 %v1150_v48, %s2847_s19 }
0x13de   :  { %v1357_v49 = vpop.permute.xlu1 %1356 }
0x13df   :  { %v1359_v50 = vmul.f32 %v2768_v33, %v1357_v49 }
0x13e1   :  { %1362 = vrot.lane.b32.xlu1 %v1359_v50, %s2848_s14 }
0x144b   :  { %v3174_v51 = vpop.permute.xlu0 %1152 }
0x144c   :  { %2500 = vmatmul.mubr.msk.f32.vlgmr.msra.gmra.mrb[12].mxu0 %vm92_vm1, %v3174_v51 }
0x144d   :  { %2653 = vmatpush3.bf16.msra.mxu0 %v3126_v8  ;;  %2521 = vmatprep.mubr.msk.f32.mxu0 %vm2842_vm0, %v2843_v5 }
0x144e   :  { %2654 = vmatprep.subr.bf16.mxu0 %v2841_v3 }
0x1451   :  { %2656 = vmatpush3.bf16.msra.mxu0 %v3139_v13 }
0x1452   :  { %2663 = vmatprep.subr.bf16.mxu0 %v2841_v3 }
0x1453   :  { %v1363_v52 = vpop.permute.xlu1 %1362 }
0x1454   :  { %v1365_v53 = vsel %vm92_vm1, %v3043_v36, %v1363_v52 }
0x1455   :  { %2522 = vmatmul.mubr.msk.f32.vlgmr.msra.gmra.mrb[14].mxu0 %vm225_vm6, %v1365_v53 }
0x1456   :  { %2665 = vmatpush3.bf16.msra.mxu0 %v3126_v8  ;;  %2543 = vmatprep.mubr.msk.f32.mxu0 %vm2842_vm0, %v2843_v5 }
0x1457   :  { %2666 = vmatprep.subr.bf16.mxu0 %v2841_v3 }
0x145a   :  { %2668 = vmatpush3.bf16.msra.mxu0 %v3139_v13 }
0x145b   :  { %2675 = vmatprep.subr.bf16.mxu0 %v2841_v3 }
0x151f   :  { %v1222_v46 = vpop.f32.mrb[12].mxu0 }
0x1520   :  { %v3195_v57 = vadd.f32 %v1222_v46, %v455_v56  ;;  %v2501_v36 = vpop.f32.mrb[13].mxu0 }
0x1528   :  { %v1435_v58 = vpop.f32.mrb[14].mxu0 }
0x1529   :  { %v1436_v59 = vadd.f32 %v3160_v12, %v1435_v58  ;;  %v2523_v60 = vpop.f32.mrb[15].mxu0 }
0x152b   :  { %2773 = vtanh.f32 %v1436_v59  ;;  %v2307_v62 = vmul.f32 -1.442695, %v1436_v59 }
0x152d   :  { %2775 = vpow2.f32 %v2307_v62 }
0x1535   :  { %v2774_v61 = vpop.eup %2773 }
0x1536   :  { %1448 = vrot.lane.b32.xlu0 %v2774_v61, %s2845_s18 }
0x1537   :  { %v2776_v63 = vpop.eup %2775 }
0x1538   :  { %v1442_v0 = vadd.f32 1.0, %v2776_v63 }
0x153a   :  { %2777 = vrcp.f32 %v1442_v0 }
0x1544   :  { %v2778_v1 = vpop.eup %2777 }
0x1545   :  { %v1446_v4 = vmul.f32 %v2778_v1, %v1353_v42 }
0x15a8   :  { %v1449_v2 = vpop.permute.xlu0 %1448 }
0x15a9   :  { %v1451_v54 = vmul.f32 %v2778_v1, %v1449_v2 }
0x15ab   :  { %1453 = vrot.lane.b32.xlu1 %v1451_v54, %s2846_s12 }
0x161d   :  { %v1454_v9 = vpop.permute.xlu1 %1453 }
0x161e   :  { %v1456_v10 = vadd.f32 %v1454_v9, %v1446_v4 }
0x1620   :  { %2779 = vtanh.f32 %v1456_v10 }
0x162a   :  { %v2780_v14 = vpop.eup %2779 }
0x162b   :  { %1459 = vrot.lane.b32.xlu0 %v2780_v14, %s2846_s12 }
0x169d   :  { %v1460_v15 = vpop.permute.xlu0 %1459 }
0x169e   :  { %v1462_v16 = vmul.f32 %v2778_v1, %v1460_v15 }
0x16a0   :  { %1465 = vrot.lane.b32.xlu1 %v1462_v16, %s2848_s14 }
0x1712   :  { %v1466_v17 = vpop.permute.xlu1 %1465 }
0x1713   :  { %v1468_v18 = vsel %vm92_vm1, %v3080_v7, %v1466_v17 }
0x1714   :  { %2533 = vmatmul.mubr.msk.f32.vlgmr.msra.gmra.mrb[16].mxu1 %vm225_vm6, %v1468_v18 }
0x1715   :  { %2671 = vmatpush3.bf16.msra.mxu1 %v3126_v8  ;;  %2554 = vmatprep.mubr.msk.f32.mxu1 %vm2842_vm0, %v2843_v5 }
0x1716   :  { %2672 = vmatprep.subr.bf16.mxu1 %v2841_v3 }
0x1719   :  { %2674 = vmatpush3.bf16.msra.mxu1 %v3139_v13 }
0x171a   :  { %2681 = vmatprep.subr.bf16.mxu1 %v2841_v3 }
0x17e7   :  { %v1538_v19 = vpop.f32.mrb[16].mxu1 }
0x17e8   :  { %v1539_v20 = vadd.f32 %v3160_v12, %v1538_v19  ;;  %v2534_v21 = vpop.f32.mrb[17].mxu1 }
0x17ea   :  { %2781 = vtanh.f32 %v1539_v20  ;;  %v2309_v7 = vmul.f32 -1.442695, %v1539_v20 }
0x17ec   :  { %2783 = vpow2.f32 %v2309_v7 }
0x17f4   :  { %v2782_v22 = vpop.eup %2781 }
0x17f5   :  { %1551 = vrot.lane.b32.xlu0 %v2782_v22, %s2845_s18 }
0x17f6   :  { %v2784_v23 = vpop.eup %2783 }
0x17f7   :  { %v1545_v6 = vadd.f32 1.0, %v2784_v23 }
0x17f9   :  { %2785 = vrcp.f32 %v1545_v6 }
0x1803   :  { %v2786_v24 = vpop.eup %2785 }
0x1804   :  { %v1549_v28 = vmul.f32 %v2786_v24, %v1456_v10 }
0x1867   :  { %v1552_v25 = vpop.permute.xlu0 %1551 }
0x1868   :  { %v1554_v27 = vmul.f32 %v2786_v24, %v1552_v25 }
0x186a   :  { %1556 = vrot.lane.b32.xlu1 %v1554_v27, %s2846_s12 }
0x18dc   :  { %v1557_v29 = vpop.permute.xlu1 %1556 }
0x18dd   :  { %v1559_v30 = vadd.f32 %v1557_v29, %v1549_v28  ;;  %v2302_v29 = vmul.f32 -1.442695, %v3195_v57 }
0x18df   :  { %2787 = vtanh.f32 %v1559_v30 }
0x18e9   :  { %v2788_v31 = vpop.eup %2787 }
0x18ea   :  { %1562 = vrot.lane.b32.xlu0 %v2788_v31, %s2846_s12 }
0x195c   :  { %v1563_v32 = vpop.permute.xlu0 %1562 }
0x195d   :  { %v1565_v33 = vmul.f32 %v2786_v24, %v1563_v32 }
0x195f   :  { %1568 = vrot.lane.b32.xlu1 %v1565_v33, %s2848_s14 }
0x19d1   :  { %v1569_v34 = vpop.permute.xlu1 %1568 }
0x19d2   :  { %v1571_v35 = vsel %vm92_vm1, %v3093_v26, %v1569_v34 }
0x19d3   :  { %2544 = vmatmul.mubr.msk.f32.vlgmr.msra.gmra.mrb[16].mxu0 %vm225_vm6, %v1571_v35 }
0x19d4   :  { %2677 = vmatpush3.bf16.msra.mxu0 %v3126_v8  ;;  %2565 = vmatprep.mubr.msk.f32.mxu0 %vm2842_vm0, %v2843_v5 }
0x19d5   :  { %2678 = vmatprep.subr.bf16.mxu0 %v2841_v3 }
0x19d8   :  { %2680 = vmatpush3.bf16.msra.mxu0 %v3139_v13 }
0x19d9   :  { %2687 = vmatprep.subr.bf16.mxu0 %v2841_v3 }
0x1aa6   :  { %v1641_v37 = vpop.f32.mrb[16].mxu0 }
0x1aa7   :  { %v1642_v38 = vadd.f32 %v3160_v12, %v1641_v37  ;;  %v2545_v40 = vpop.f32.mrb[17].mxu0 }
0x1aa9   :  { %2789 = vtanh.f32 %v1642_v38  ;;  %v2311_v26 = vmul.f32 -1.442695, %v1642_v38 }
0x1aab   :  { %2791 = vpow2.f32 %v2311_v26 }
0x1ab3   :  { %v2790_v41 = vpop.eup %2789 }
0x1ab4   :  { %1654 = vrot.lane.b32.xlu0 %v2790_v41, %s2845_s18 }
0x1ab5   :  { %v2792_v42 = vpop.eup %2791 }
0x1ab6   :  { %v1648_v43 = vadd.f32 1.0, %v2792_v42 }
0x1ab8   :  { %2793 = vrcp.f32 %v1648_v43 }
0x1ac2   :  { %v2794_v44 = vpop.eup %2793 }
0x1ac3   :  { %v1652_v49 = vmul.f32 %v2794_v44, %v1559_v30 }
0x1b26   :  { %v1655_v47 = vpop.permute.xlu0 %1654 }
0x1b27   :  { %v1657_v48 = vmul.f32 %v2794_v44, %v1655_v47 }
0x1b29   :  { %1659 = vrot.lane.b32.xlu1 %v1657_v48, %s2846_s12 }
0x1b9b   :  { %v1660_v50 = vpop.permute.xlu1 %1659 }
0x1b9c   :  { %v1662_v52 = vadd.f32 %v1660_v50, %v1652_v49 }
0x1b9e   :  { %2795 = vtanh.f32 %v1662_v52 }
0x1ba8   :  { %v2796_v53 = vpop.eup %2795 }
0x1ba9   :  { %1665 = vrot.lane.b32.xlu0 %v2796_v53, %s2846_s12 }
0x1c1b   :  { %v1666_v56 = vpop.permute.xlu0 %1665 }
0x1c1c   :  { %v1668_v46 = vmul.f32 %v2794_v44, %v1666_v56 }
0x1c1e   :  { %1671 = vrot.lane.b32.xlu1 %v1668_v46, %s2848_s14 }
0x1c90   :  { %v1672_v36 = vpop.permute.xlu1 %1671 }
0x1c91   :  { %v1674_v58 = vsel %vm92_vm1, %v3106_v45, %v1672_v36 }
0x1c92   :  { %2555 = vmatmul.mubr.msk.f32.vlgmr.msra.gmra.mrb[18].mxu1 %vm225_vm6, %v1674_v58 }
0x1c93   :  { %2683 = vmatpush3.bf16.msra.mxu1 %v3126_v8  ;;  %2576 = vmatprep.mubr.msk.f32.mxu1 %vm2842_vm0, %v2843_v5 }
0x1c94   :  { %2684 = vmatprep.subr.bf16.mxu1 %v2841_v3 }
0x1c97   :  { %2686 = vmatpush3.bf16.msra.mxu1 %v3139_v13 }
0x1c98   :  { %2693 = vmatprep.subr.bf16.mxu1 %v2841_v3 }
0x1d65   :  { %v1744_v59 = vpop.f32.mrb[18].mxu1 }
0x1d66   :  { %v1745_v60 = vadd.f32 %v3160_v12, %v1744_v59  ;;  %v2556_v61 = vpop.f32.mrb[19].mxu1 }
0x1d68   :  { %2797 = vtanh.f32 %v1745_v60  ;;  %v2313_v45 = vmul.f32 -1.442695, %v1745_v60 }
0x1d6a   :  { %2799 = vpow2.f32 %v2313_v45  ;;  %v2086_v45 = vld [vmem:[%s3318_s7] sm:$0xff] }
0x1d72   :  { %v2798_v62 = vpop.eup %2797 }
0x1d73   :  { %1757 = vrot.lane.b32.xlu0 %v2798_v62, %s2845_s18 }
0x1d74   :  { %v2800_v63 = vpop.eup %2799 }
0x1d75   :  { %v1751_v0 = vadd.f32 1.0, %v2800_v63  ;;  %v2087_v63 = vld [vmem:[%s3318_s7 + $0x8] sm:$0xff] }
0x1d77   :  { %2801 = vrcp.f32 %v1751_v0  ;;  %v2276_v0 = vld [vmem:[%s3317_s6] ss:$0 sm:$0xff] }
0x1d81   :  { %v2802_v1 = vpop.eup %2801 }
0x1d82   :  { %v1755_v4 = vmul.f32 %v2802_v1, %v1662_v52 }
0x1de5   :  { %v1758_v2 = vpop.permute.xlu0 %1757 }
0x1de6   :  { %v1760_v54 = vmul.f32 %v2802_v1, %v1758_v2 }
0x1de8   :  { %1762 = vrot.lane.b32.xlu1 %v1760_v54, %s2846_s12 }
0x1e5a   :  { %v1763_v9 = vpop.permute.xlu1 %1762 }
0x1e5b   :  { %v1765_v10 = vadd.f32 %v1763_v9, %v1755_v4  ;;  %v296_v9 = vadd.f32 %v2276_v0, %v3015_v55 }
0x1e5d   :  { %2803 = vtanh.f32 %v1765_v10 }
0x1e67   :  { %v2804_v14 = vpop.eup %2803 }
0x1e68   :  { %1768 = vrot.lane.b32.xlu0 %v2804_v14, %s2846_s12  ;;  %v2084_v14 = vmax.f32 %v296_v9, 0.0 }
0x1eda   :  { %v1769_v15 = vpop.permute.xlu0 %1768 }
0x1edb   :  { %v1771_v16 = vmul.f32 %v2802_v1, %v1769_v15  ;;  %v2697_v1 = vpack.c.bf16 %v2087_v63, %v2086_v45 }
0x1edd   :  { %1774 = vrot.lane.b32.xlu1 %v1771_v16, %s2848_s14 }
0x1f4f   :  { %v1775_v17 = vpop.permute.xlu1 %1774 }
0x1f50   :  { %v1777_v18 = vsel %vm92_vm1, %v3134_v11, %v1775_v17 }
0x1f51   :  { %2566 = vmatmul.mubr.msk.f32.vlgmr.msra.gmra.mrb[18].mxu0 %vm225_vm6, %v1777_v18 }
0x1f52   :  { %2689 = vmatpush3.bf16.msra.mxu0 %v3126_v8  ;;  %2587 = vmatprep.mubr.msk.f32.mxu0 %vm2842_vm0, %v2843_v5 }
0x1f53   :  { %2690 = vmatprep.subr.bf16.mxu0 %v2841_v3 }
0x1f56   :  { %2692 = vmatpush3.bf16.msra.mxu0 %v3139_v13 }
0x1f57   :  { %2696 = vmatprep.subr.bf16.mxu0 %v2841_v3 }
0x2024   :  { %v1847_v19 = vpop.f32.mrb[18].mxu0 }
0x2025   :  { %v1848_v20 = vadd.f32 %v3160_v12, %v1847_v19  ;;  %v2567_v21 = vpop.f32.mrb[19].mxu0 }
0x2027   :  { %2805 = vtanh.f32 %v1848_v20  ;;  %v2315_v11 = vmul.f32 -1.442695, %v1848_v20 }
0x2029   :  { %2807 = vpow2.f32 %v2315_v11 }
0x2031   :  { %v2806_v22 = vpop.eup %2805 }
0x2032   :  { %1860 = vrot.lane.b32.xlu0 %v2806_v22, %s2845_s18 }
0x2033   :  { %v2808_v8 = vpop.eup %2807 }
0x2034   :  { %v1854_v7 = vadd.f32 1.0, %v2808_v8 }
0x2036   :  { %2809 = vrcp.f32 %v1854_v7 }
0x2040   :  { %v2810_v23 = vpop.eup %2809 }
0x2041   :  { %v1858_v13 = vmul.f32 %v2810_v23, %v1765_v10  ;;  %v2088_v10 = vld [vmem:[%s3318_s7 + $0x10] sm:$0xff] }
0x20a4   :  { %v1861_v6 = vpop.permute.xlu0 %1860 }
0x20a5   :  { %v1863_v24 = vmul.f32 %v2810_v23, %v1861_v6  ;;  %v2089_v6 = vld [vmem:[%s3319_s8] sm:$0xff] }
0x20a7   :  { %1865 = vrot.lane.b32.xlu1 %v1863_v24, %s2846_s12  ;;  %v2090_v24 = vld [vmem:[%s3319_s8 + $0x8] sm:$0xff] }
0x2119   :  { %v1866_v3 = vpop.permute.xlu1 %1865 }
0x211a   :  { %v1868_v25 = vadd.f32 %v1866_v3, %v1858_v13  ;;  %v2694_v13 = vpack.c.bf16 %v2090_v24, %v2089_v6 }
0x211c   :  { %2811 = vtanh.f32 %v1868_v25 }
0x211d   :  { %2813 = vtanh.f32 %v3195_v57 }
0x211e   :  { %2815 = vpow2.f32 %v2302_v29 }
0x2126   :  { %v2812_v27 = vpop.eup %2811 }
0x2127   :  { %1871 = vrot.lane.b32.xlu0 %v2812_v27, %s2846_s12  ;;  %v2814_v28 = vpop.eup %2813 }
0x2128   :  { %v2816_v30 = vpop.eup %2815 }
0x2129   :  { %v1229_v31 = vadd.f32 1.0, %v2816_v30 }
0x212b   :  { %1235 = vrot.lane.b32.xlu0 %v2814_v28, %s2845_s18  ;;  %2817 = vrcp.f32 %v1229_v31  ;;  %v2322_v31 = vld [vmem:[%s3320_s9] ss:$0 sm:$0xff] }
0x2135   :  { %v2818_v34 = vpop.eup %2817 }
0x2136   :  { %v1233_v57 = vmul.f32 %v2818_v34, %v3167_v39 }
0x2199   :  { %v1872_v32 = vpop.permute.xlu0 %1871 }
0x219a   :  { %v1874_v33 = vmul.f32 %v2810_v23, %v1872_v32 }
0x219c   :  { %1877 = vrot.lane.b32.xlu1 %v1874_v33, %s2848_s14 }
0x219d   :  { %v1236_v35 = vpop.permute.xlu0 %1235 }
0x219e   :  { %v1238_v37 = vmul.f32 %v2818_v34, %v1236_v35 }
0x21a0   :  { %1240 = vrot.lane.b32.xlu0 %v1238_v37, %s2846_s12 }
0x220e   :  { %v1878_v38 = vpop.permute.xlu1 %1877 }
0x220f   :  { %v1880_v40 = vsel %vm92_vm1, %v3174_v51, %v1878_v38 }
0x2210   :  { %2577 = vmatmul.mubr.msk.f32.vlgmr.msra.gmra.mrb[20].mxu1 %vm225_vm6, %v1880_v40 }
0x2211   :  { %2594 = vmatprep.mubr.msk.f32.mxu1 %vm2842_vm0, %v2843_v5  ;;  %2695 = vmatpush3.bf16.msra.mxu1 %v2694_v13 }
0x2212   :  { %v1241_v41 = vpop.permute.xlu0 %1240 }
0x2213   :  { %v1243_v26 = vadd.f32 %v1241_v41, %v1233_v57 }
0x2215   :  { %2819 = vtanh.f32 %v1243_v26 }
0x221f   :  { %v2820_v42 = vpop.eup %2819 }
0x2220   :  { %1246 = vrot.lane.b32.xlu0 %v2820_v42, %s2846_s12 }
0x2292   :  { %v1247_v43 = vpop.permute.xlu0 %1246 }
0x2293   :  { %v1249_v44 = vmul.f32 %v2818_v34, %v1247_v43 }
0x2295   :  { %1979 = vrot.lane.b32.xlu0 %v1249_v44, %s2847_s19 }
0x22e3   :  { %v1950_v47 = vpop.f32.mrb[20].mxu1 }
0x22e4   :  { %v1951_v51 = vadd.f32 %v3160_v12, %v1950_v47  ;;  %v2578_v48 = vpop.f32.mrb[21].mxu1 }
0x22e6   :  { %2821 = vtanh.f32 %v1951_v51  ;;  %v2317_v39 = vmul.f32 -1.442695, %v1951_v51 }
0x22e8   :  { %2823 = vpow2.f32 %v2317_v39 }
0x22f0   :  { %v2822_v49 = vpop.eup %2821 }
0x22f1   :  { %1963 = vrot.lane.b32.xlu1 %v2822_v49, %s2845_s18 }
0x22f2   :  { %v2824_v50 = vpop.eup %2823 }
0x22f3   :  { %v1957_v52 = vadd.f32 1.0, %v2824_v50 }
0x22f5   :  { %2825 = vrcp.f32 %v1957_v52 }
0x22ff   :  { %v2826_v53 = vpop.eup %2825 }
0x2300   :  { %v1961_v36 = vmul.f32 %v2826_v53, %v1868_v25 }
0x2307   :  { %v1980_v2 = vpop.permute.xlu0 %1979 }
0x2363   :  { %v1964_v56 = vpop.permute.xlu1 %1963 }
0x2364   :  { %v1966_v46 = vmul.f32 %v2826_v53, %v1964_v56 }
0x2366   :  { %1968 = vrot.lane.b32.xlu1 %v1966_v46, %s2846_s12 }
0x23d8   :  { %v1969_v58 = vpop.permute.xlu1 %1968 }
0x23d9   :  { %v1971_v59 = vadd.f32 %v1969_v58, %v1961_v36 }
0x23db   :  { %2827 = vtanh.f32 %v1971_v59 }
0x23e5   :  { %v2828_v60 = vpop.eup %2827 }
0x23e6   :  { %1974 = vrot.lane.b32.xlu1 %v2828_v60, %s2846_s12 }
0x2458   :  { %v1975_v61 = vpop.permute.xlu1 %1974 }
0x2459   :  { %v1977_v62 = vmul.f32 %v2826_v53, %v1975_v61 }
0x245b   :  { %1983 = vrot.lane.b32.xlu1 %v1977_v62, %s2848_s14 }
0x24cd   :  { %v1984_v54 = vpop.permute.xlu1 %1983 }
0x24ce   :  { %v1986_v4 = vsel %vm92_vm1, %v1980_v2, %v1984_v54 }
0x24cf   :  { %2588 = vmatmul.mubr.msk.f32.vlgmr.msra.gmra.mrb[20].mxu0 %vm225_vm6, %v1986_v4 }
0x24d0   :  { %2698 = vmatpush3.bf16.msra.mxu0 %v2697_v1  ;;  %2603 = vmatprep.mubr.msk.f32.mxu0 %vm2842_vm0, %v2843_v5 }
0x24d1   :  { %2601 = vmatprep.subr.mxu0 %v2843_v5 }
0x24d4   :  { %2602 = vmatpush3.msra.mxu0 %v2088_v10 }
0x24d5   :  { %2604 = vmatmul.mubr.msk.f32.vlgmr.msra.gmra.mrb[22].mxu0 %vm2166_vm7, %v2084_v14 }
0x25a2   :  { %v2056_v15 = vpop.f32.mrb[20].mxu0 }
0x25a3   :  { %v2057_v16 = vadd.f32 %v3160_v12, %v2056_v15  ;;  %v2589_v55 = vpop.f32.mrb[21].mxu0 }
0x25a5   :  { %2829 = vtanh.f32 %v2057_v16  ;;  %v2319_v20 = vmul.f32 -1.442695, %v2057_v16 }
0x25a7   :  { %2831 = vpow2.f32 %v2319_v20 }
0x25a8   :  { %v2236_v17 = vpop.f32.mrb[22].mxu0 }
0x25a9   :  { %v2605_v18 = vpop.f32.mrb[23].mxu0 }
0x25af   :  { %v2830_v19 = vpop.eup %2829 }
0x25b0   :  { %2069 = vrot.lane.b32.xlu0 %v2830_v19, %s2845_s18 }
0x25b1   :  { %v2832_v5 = vpop.eup %2831 }
0x25b2   :  { %v2063_v21 = vadd.f32 1.0, %v2832_v5 }
0x25b4   :  { %2833 = vrcp.f32 %v2063_v21 }
0x25be   :  { %v2834_v22 = vpop.eup %2833 }
0x25bf   :  { %v2067_v7 = vmul.f32 %v2834_v22, %v1971_v59 }
0x2622   :  { %v2070_v11 = vpop.permute.xlu0 %2069 }
0x2623   :  { %v2072_v8 = vmul.f32 %v2834_v22, %v2070_v11 }
0x2625   :  { %2074 = vrot.lane.b32.xlu1 %v2072_v8, %s2846_s12 }
0x2697   :  { %v2075_v23 = vpop.permute.xlu1 %2074 }
0x2698   :  { %v2077_v12 = vadd.f32 %v2075_v23, %v2067_v7 }
0x269a   :  { %2835 = vtanh.f32 %v2077_v12 }
0x26a4   :  { %v2836_v3 = vpop.eup %2835 }
0x26a5   :  { %2080 = vrot.lane.b32.xlu0 %v2836_v3, %s2846_s12 }
0x2717   :  { %v2081_v25 = vpop.permute.xlu0 %2080 }
0x2718   :  { %v2083_v27 = vmul.f32 %v2834_v22, %v2081_v25 }
0x271a   :  { %v2085_v28 = vmax.f32 %v2083_v27, 0.0 }
0x271c   :  { %2092 = vrot.lane.b32.xlu1 %v2085_v28, %s2847_s19 }
0x278e   :  { %v2093_v29 = vpop.permute.xlu1 %2092 }
0x278f   :  { %2595 = vmatmul.mubr.msk.f32.vlgmr.msra.gmra.mrb[22].mxu1 %vm92_vm1, %v2093_v29 }
0x2862   :  { %v2162_v30 = vpop.f32.mrb[22].mxu1 }
0x2863   :  { %v2237_v32 = vadd.f32 %v2236_v17, %v2162_v30  ;;  %v2596_v33 = vpop.f32.mrb[23].mxu1 }
0x2865   :  { %v2247_v34 = vadd.f32 %v2322_v31, %v2237_v32 }
0x2867   :  { %v2249_v35 = vsel %vm2248_vm8, %v2247_v34, -inf }
0x2868   :  { %2250 = vmax.xlane.f32.xlu0 %v2249_v35 }
0x28f5   :  { %v2251_v37 = vpop.xlane.xlu0 %2250 }
0x28f6   :  { %v2252_v38 = vsub.f32 %v2247_v34, %v2251_v37 }
0x28f8   :  { %v2253_v40 = vmul.f32 1.442695, %v2252_v38 }
0x28fa   :  { %2837 = vpow2.f32 %v2253_v40 }
0x2904   :  { %v2838_v57 = vpop.eup %2837 }
0x2905   :  { %v2255_v41 = vsel %vm2248_vm8, %v2838_v57, 0.0 }
0x2906   :  { %2256 = vadd.xlane.f32.xlu1 %v2255_v41 }
0x2993   :  { %v2257_v26 = vpop.xlane.xlu1 %2256 }
0x2994   :  { %2839 = vrcp.f32 %v2257_v26 }
0x299e   :  { %v2840_v42 = vpop.eup %2839 }
0x299f   :  { %v2259_v43 = vmul.f32 %v2840_v42, %v2838_v57 }
0x29a1   :  { %2260 = vst.msk [vmem:[%s3327_s16] sm:$0xff] %vm2248_vm8, %v2259_v43 }

</bundles_post_ra>
